<compile_context>
chip_gen: v6e
topology: v6e:2x2x1
jax: 0.10.0
libtpu: 0.0.40
codegen_flags: <defaults>
</compile_context>

<pallas_src>
import jax
import jax.numpy as jnp
from jax.experimental import pallas as pl
from jax.experimental.pallas import tpu as pltpu

HIDDEN = 512                 # hardcoded by nn.Linear(size, 512) in the module
HEADS = 8
DK = HIDDEN // HEADS
FF = 4 * HIDDEN
VPAD = 128                   # padded vocab lane width (all vocab sizes <= 128)
LN_EPS = 1e-6
MASK_FILL = float(10 ^ 5)    # NB: Python XOR in the PyTorch source -> 15.0 (reproduced)
# 40 MiB scoped VMEM: valid on v5e/v6e (128 MiB) and v7x (64 MiB physical).
VMEM_LIMIT = 40 * 1024 * 1024

_VMEM = pltpu.MemorySpace.VMEM


def _layernorm(x, g, b):
    mu = jnp.mean(x, axis=-1, keepdims=True)
    var = jnp.mean((x - mu) ** 2, axis=-1, keepdims=True)
    return (x - mu) * jax.lax.rsqrt(var + LN_EPS) * g + b


# ----------------------------------------------------------------------------
# Kernel 1: per-attribute input linear (vocab -> 512) + masked-position fill.
# Single invocation: one batched einsum over all S attributes (weights ~1 MiB
# bf16, trivially VMEM-resident).
# ----------------------------------------------------------------------------
def input_embed_kernel(x_ref, mpos_ref, w_ref, b_ref, o_ref):
    # x: (S,B,VPAD) f32; mpos: (S,B,1) f32; w: (S,VPAD,H) bf16; b: (S,1,H) f32
    y = jnp.einsum('sbv,svh->sbh',
                   x_ref[...].astype(jnp.bfloat16), w_ref[...],
                   preferred_element_type=jnp.float32) + b_ref[...]
    # masked positions get the constant fill value (reproduces torch.full((512,), 15.0))
    o_ref[...] = jnp.where(mpos_ref[...] > 0, jnp.float32(MASK_FILL), y)


def input_embed(x_sbv, mpos_sb1, w_in, b_in):
    S, B, _ = x_sbv.shape
    return pl.pallas_call(
        input_embed_kernel,
        out_shape=jax.ShapeDtypeStruct((S, B, HIDDEN), jnp.float32),
        in_specs=[pl.BlockSpec(memory_space=_VMEM)] * 4,
        out_specs=pl.BlockSpec(memory_space=_VMEM),
    )(x_sbv, mpos_sb1, w_in, b_in)


# ----------------------------------------------------------------------------
# Kernel 2: ALL transformer layers fused into one pallas_call.
# Grid axis = layer ("arbitrary"); activation (B,S,H) stays resident in the
# output block; per-layer weights stream via index_map; B*S rows are folded
# into the matmul M dimension for QKV / output / FFN projections.
# ----------------------------------------------------------------------------
def transformer_layers_kernel(x0_ref, unm_ref,
                              ln1g_ref, ln1b_ref,
                              wq_ref, bq_ref, wk_ref, bk_ref, wv_ref, bv_ref,
                              wo_ref, bo_ref,
                              ln2g_ref, ln2b_ref,
                              w1_ref, b1_ref, w2_ref, b2_ref,
                              o_ref):
    l = pl.program_id(0)

    @pl.when(l == 0)
    def _():
        o_ref[...] = x0_ref[...]

    B, S, H = o_ref.shape
    x2 = o_ref[...].reshape(B * S, H)                         # (B*S, H) f32

    # attention mask: attend iff BOTH positions are un-masked (outer product,
    # formed in-kernel from the (B,S) flag -> no (B,S,S) block residency)
    unm = unm_ref[...]                                        # (B, S), 1.0 = un-masked
    pair = unm[:, :, None] * unm[:, None, :]                  # (B, S, S)
    neg = jnp.float32(-1e9)

    # ---- attention sublayer (pre-LN) ----
    xn = _layernorm(x2, ln1g_ref[0], ln1b_ref[0]).astype(jnp.bfloat16)
    qf = jnp.dot(xn, wq_ref[0], preferred_element_type=jnp.float32) + bq_ref[0]
    kf = jnp.dot(xn, wk_ref[0], preferred_element_type=jnp.float32) + bk_ref[0]
    vf = jnp.dot(xn, wv_ref[0], preferred_element_type=jnp.float32) + bv_ref[0]
    # fold 1/sqrt(dk) into q; both QK^T operands bf16 (single MXU pass, f32 acc)
    q = (qf * jnp.float32(1.0 / (DK ** 0.5))).astype(jnp.bfloat16)
    k = kf.astype(jnp.bfloat16)
    v = vf.astype(jnp.bfloat16)

    wo = wo_ref[0]                                            # (H, H) bf16, loaded once
    attn_out = jnp.zeros((B * S, H), jnp.float32)
    for h in range(HEADS):
        sl = slice(h * DK, (h + 1) * DK)
        qh = q[:, sl].reshape(B, S, DK)
        kh = k[:, sl].reshape(B, S, DK)
        vh = v[:, sl].reshape(B, S, DK)
        s = jnp.einsum('bqd,bkd->bqk', qh, kh,
                       preferred_element_type=jnp.float32)
        s = jnp.where(pair > 0, s, neg)                       # masked_fill(mask==0, -1e9)
        s = s - jnp.max(s, axis=-1, keepdims=True)
        p = jnp.exp(s)
        p = p / jnp.sum(p, axis=-1, keepdims=True)            # exact softmax division
        ch = jnp.einsum('bqk,bkd->bqd', p.astype(jnp.bfloat16), vh,
                        preferred_element_type=jnp.float32).reshape(B * S, DK)
        # accumulate this head's contribution through its W_O row-slab
        # (sublane slice of the weight; no 64-lane concatenate of contexts)
        attn_out = attn_out + jnp.dot(ch.astype(jnp.bfloat16), wo[sl, :],
                                      preferred_element_type=jnp.float32)
    x2 = x2 + attn_out + bo_ref[0]                            # dropout = identity

    # ---- FFN sublayer (pre-LN) ----
    xn2 = _layernorm(x2, ln2g_ref[0], ln2b_ref[0]).astype(jnp.bfloat16)
    h1 = jax.nn.gelu(
        jnp.dot(xn2, w1_ref[0], preferred_element_type=jnp.float32) + b1_ref[0]
    ).astype(jnp.bfloat16)                                    # fused gelu + bf16 cast
    ff = jnp.dot(h1, w2_ref[0], preferred_element_type=jnp.float32) + b2_ref[0]
    x2 = x2 + ff                                              # dropout = identity

    o_ref[...] = x2.reshape(B, S, H)


def transformer_layers(x, unmasked, lp):
    B, S, _ = x.shape
    L = lp["wq"].shape[0]

    def lw(name):
        arr = lp[name]
        nd = arr.ndim
        block = (1,) + tuple(arr.shape[1:])
        return pl.BlockSpec(block, lambda l, nd=nd: (l,) + (0,) * (nd - 1))

    in_specs = [
        pl.BlockSpec((B, S, HIDDEN), lambda l: (0, 0, 0)),    # x0 (fetched once)
        pl.BlockSpec((B, S), lambda l: (0, 0)),               # un-masked flags
        lw("ln1_g"), lw("ln1_b"),
        lw("wq"), lw("bq"), lw("wk"), lw("bk"), lw("wv"), lw("bv"),
        lw("wo"), lw("bo"),
        lw("ln2_g"), lw("ln2_b"),
        lw("w1"), lw("b1"), lw("w2"), lw("b2"),
    ]
    args = (x, unmasked,
            lp["ln1_g"], lp["ln1_b"],
            lp["wq"], lp["bq"], lp["wk"], lp["bk"], lp["wv"], lp["bv"],
            lp["wo"], lp["bo"],
            lp["ln2_g"], lp["ln2_b"],
            lp["w1"], lp["b1"], lp["w2"], lp["b2"])
    # Default double-buffering on the layer axis (weight-DMA bound; deeper
    # pipelining only burns VMEM).
    return pl.pallas_call(
        transformer_layers_kernel,
        out_shape=jax.ShapeDtypeStruct((B, S, HIDDEN), jnp.float32),
        grid_spec=pltpu.PrefetchScalarGridSpec(
            num_scalar_prefetch=0, grid=(L,),
            in_specs=in_specs,
            out_specs=pl.BlockSpec((B, S, HIDDEN), lambda l: (0, 0, 0)),
        ),
        compiler_params=pltpu.CompilerParams(
            dimension_semantics=("arbitrary",),
            vmem_limit_bytes=VMEM_LIMIT),
    )(*args)


# ----------------------------------------------------------------------------
# Kernel 3: classification head — per-attribute linear (512 -> vocab) +
# log_softmax over the valid lanes.  Single invocation, batched over S.
# ----------------------------------------------------------------------------
def head_kernel(x_ref, w_ref, b_ref, valid_ref, o_ref):
    # x: (S,B,H) f32; w: (S,H,VPAD) bf16; b/valid: (S,1,VPAD) f32
    logits = jnp.einsum('sbh,shv->sbv',
                        x_ref[...].astype(jnp.bfloat16), w_ref[...],
                        preferred_element_type=jnp.float32) + b_ref[...]
    valid = valid_ref[...]                                    # (S, 1, VPAD)
    masked = jnp.where(valid > 0, logits, jnp.float32(-1e30))
    m = jnp.max(masked, axis=-1, keepdims=True)
    z = logits - m
    lse = jnp.log(jnp.sum(jnp.exp(z) * valid, axis=-1, keepdims=True))
    o_ref[...] = z - lse     # valid lanes hold log_softmax; pad lanes are garbage


def head_call(x_sbh, w_head, b_head, valid_head):
    S, B, _ = x_sbh.shape
    return pl.pallas_call(
        head_kernel,
        out_shape=jax.ShapeDtypeStruct((S, B, VPAD), jnp.float32),
        in_specs=[pl.BlockSpec(memory_space=_VMEM)] * 4,
        out_specs=pl.BlockSpec(memory_space=_VMEM),
    )(x_sbh, w_head, b_head, valid_head)


# ----------------------------------------------------------------------------
# Parameter initialization (deterministic, synthetic).  Matmul weights are
# stored bf16 (MXU operands); biases / LN params stay f32.
# ----------------------------------------------------------------------------
def init_params(key, vocab_sizes, n_layers):
    S = len(vocab_sizes)
    keys = iter(jax.random.split(key, 256))
    std = 0.02

    def rnd(shape):
        return std * jax.random.normal(next(keys), shape, jnp.float32)

    w_in = jnp.zeros((S, VPAD, HIDDEN), jnp.float32)
    b_in = jnp.zeros((S, 1, HIDDEN), jnp.float32)
    for s, v in enumerate(vocab_sizes.values()):
        w_in = w_in.at[s, :v, :].set(rnd((v, HIDDEN)))
        b_in = b_in.at[s, 0].set(rnd((HIDDEN,)))
    w_in = w_in.astype(jnp.bfloat16)

    L = n_layers
    layers = {
        "ln1_g": jnp.ones((L, 1, HIDDEN), jnp.float32),
        "ln1_b": jnp.zeros((L, 1, HIDDEN), jnp.float32),
        "ln2_g": jnp.ones((L, 1, HIDDEN), jnp.float32),
        "ln2_b": jnp.zeros((L, 1, HIDDEN), jnp.float32),
        "wq": rnd((L, HIDDEN, HIDDEN)).astype(jnp.bfloat16),
        "wk": rnd((L, HIDDEN, HIDDEN)).astype(jnp.bfloat16),
        "wv": rnd((L, HIDDEN, HIDDEN)).astype(jnp.bfloat16),
        "wo": rnd((L, HIDDEN, HIDDEN)).astype(jnp.bfloat16),
        "w1": rnd((L, HIDDEN, FF)).astype(jnp.bfloat16),
        "w2": rnd((L, FF, HIDDEN)).astype(jnp.bfloat16),
        "bq": rnd((L, 1, HIDDEN)),
        "bk": rnd((L, 1, HIDDEN)),
        "bv": rnd((L, 1, HIDDEN)),
        "bo": rnd((L, 1, HIDDEN)),
        "b1": rnd((L, 1, FF)),
        "b2": rnd((L, 1, HIDDEN)),
    }

    w_head = jnp.zeros((S, HIDDEN, VPAD), jnp.float32)
    b_head = jnp.zeros((S, 1, VPAD), jnp.float32)
    valid_head = jnp.zeros((S, 1, VPAD), jnp.float32)
    for s, v in enumerate(vocab_sizes.values()):
        w_head = w_head.at[s, :, :v].set(rnd((HIDDEN, v)))
        b_head = b_head.at[s, 0, :v].set(rnd((v,)))
        valid_head = valid_head.at[s, 0, :v].set(1.0)
    w_head = w_head.astype(jnp.bfloat16)

    return {"w_in": w_in, "b_in": b_in, "layers": layers,
            "w_head": w_head, "b_head": b_head, "valid_head": valid_head}


# ----------------------------------------------------------------------------
# Full forward (thin JAX glue; heavy math in the Pallas kernels above)
# ----------------------------------------------------------------------------
def bert_forward(params, x_pad, masked_position, vocab_sizes):
    B, S, _ = x_pad.shape

    # (S, B, *) layouts for the per-attribute kernels (layout plumbing in XLA)
    mposf = (masked_position != 0).astype(jnp.float32)             # (B, S)
    x_sbv = jnp.transpose(x_pad, (1, 0, 2))                        # (S, B, VPAD)
    mpos_sb1 = jnp.transpose(mposf, (1, 0))[:, :, None]            # (S, B, 1)

    x = input_embed(x_sbv, mpos_sb1, params["w_in"], params["b_in"])   # (S,B,H)
    x = jnp.transpose(x, (1, 0, 2))                                    # (B,S,H)

    # un-masked flag; the (S,S) pairwise attention mask is formed in-kernel
    unmasked = (masked_position == 0).astype(jnp.float32)          # (B, S)

    x = transformer_layers(x, unmasked, params["layers"])          # all layers fused

    x_sbh = jnp.transpose(x, (1, 0, 2))                            # (S, B, H)
    logp = head_call(x_sbh, params["w_head"], params["b_head"],
                     params["valid_head"])                         # (S, B, VPAD)

    # TODO(synk): list-of-dicts packaging (pure Python glue, same as PyTorch head)
    outputs = []
    for b in range(B):
        single = {}
        for s, (name, v) in enumerate(vocab_sizes.items()):
            single[name] = logp[s, b:b + 1, :v]                    # (1, vocab) log-probs
        outputs.append(single)
    return outputs


if __name__ == "__main__":
    vocab_sizes = {"age": 16, "gender": 8, "city": 32, "job": 24,
                   "edu": 12, "income": 20, "hobby": 40, "device": 10}
    assert all(v <= VPAD for v in vocab_sizes.values())
    B = 2
    S = len(vocab_sizes)
    N_LAYERS = 2

    key = jax.random.PRNGKey(0)
    kp, kd, km = jax.random.split(key, 3)
    params = init_params(kp, vocab_sizes, n_layers=N_LAYERS)

    # synthetic per-attribute one-hot inputs, zero-padded to VPAD lanes
    x_pad = jnp.zeros((B, S, VPAD), jnp.float32)
    dkeys = jax.random.split(kd, S)
    for s, (name, v) in enumerate(vocab_sizes.items()):
        ids = jax.random.randint(dkeys[s], (B,), 0, v)
        onehot = jax.nn.one_hot(ids, v, dtype=jnp.float32)
        x_pad = x_pad.at[:, s, :v].set(onehot)

    masked_position = jax.random.bernoulli(km, 0.3, (B, S)).astype(jnp.int32)

    outputs = bert_forward(params, x_pad, masked_position, vocab_sizes)
    for single in outputs:
        for name, arr in single.items():
            jax.block_until_ready(arr)
            assert arr.shape == (1, vocab_sizes[name])
    print("KERNEL_OK")
</pallas_src>

<mosaic_0001>
module attributes {stable_mosaic.version = 11 : i64} {
  func.func @input_embed_kernel(%arg0: memref<8x2x128xf32, #tpu.memory_space<vmem>>, %arg1: memref<8x2x1xf32, #tpu.memory_space<vmem>>, %arg2: memref<8x128x512xbf16, #tpu.memory_space<vmem>>, %arg3: memref<8x1x512xf32, #tpu.memory_space<vmem>>, %arg4: memref<8x2x512xf32, #tpu.memory_space<vmem>>) attributes {dimension_semantics = [], scalar_prefetch = 0 : i64, scratch_operands = 0 : i64, tpu.core_type = #tpu.core_type<tc>} {
    %c0 = arith.constant 0 : index
    %c0_0 = arith.constant 0 : index
    %c0_1 = arith.constant 0 : index
    %0 = vector.load %arg0[%c0, %c0_0, %c0_1] : memref<8x2x128xf32, #tpu.memory_space<vmem>>, vector<8x2x128xf32>
    %1 = arith.truncf %0 : vector<8x2x128xf32> to vector<8x2x128xbf16>
    %c0_2 = arith.constant 0 : index
    %c0_3 = arith.constant 0 : index
    %c0_4 = arith.constant 0 : index
    %2 = vector.load %arg2[%c0_2, %c0_3, %c0_4] : memref<8x128x512xbf16, #tpu.memory_space<vmem>>, vector<8x128x512xbf16>
    "tpu.trace_start"() <{level = 10 : i32, message = "sbv,svh->sbh"}> : () -> ()
    %cst = arith.constant dense<0.000000e+00> : vector<8x2x512xf32>
    %3 = tpu.matmul %1, %2, %cst {dimension_numbers = #tpu.dot_dimension_numbers<[2], [1], [1], [2], [0, 0, 0, 1, 1, 2], [0], [0]>} : vector<8x2x128xbf16>, vector<8x128x512xbf16>, vector<8x2x512xf32> -> vector<8x2x512xf32>
    "tpu.trace_stop"() : () -> ()
    %c0_5 = arith.constant 0 : index
    %c0_6 = arith.constant 0 : index
    %c0_7 = arith.constant 0 : index
    %4 = vector.load %arg3[%c0_5, %c0_6, %c0_7] : memref<8x1x512xf32, #tpu.memory_space<vmem>>, vector<8x1x512xf32>
    %5 = vector.broadcast %4 : vector<8x1x512xf32> to vector<8x2x512xf32>
    %6 = arith.addf %3, %5 : vector<8x2x512xf32>
    %c0_8 = arith.constant 0 : index
    %c0_9 = arith.constant 0 : index
    %c0_10 = arith.constant 0 : index
    %7 = vector.load %arg1[%c0_8, %c0_9, %c0_10] : memref<8x2x1xf32, #tpu.memory_space<vmem>>, vector<8x2x1xf32>
    %cst_11 = arith.constant 0.000000e+00 : f32
    %8 = vector.broadcast %cst_11 : f32 to vector<8x2x1xf32>
    %9 = arith.cmpf ogt, %7, %8 : vector<8x2x1xf32>
    %cst_12 = arith.constant 1.500000e+01 : f32
    %10 = vector.shape_cast %9 : vector<8x2x1xi1> to vector<8x2x1xi1>
    %11 = vector.broadcast %10 : vector<8x2x1xi1> to vector<8x2x512xi1>
    %12 = vector.broadcast %cst_12 : f32 to vector<8x2x512xf32>
    %13 = arith.select %11, %12, %6 : vector<8x2x512xi1>, vector<8x2x512xf32>
    %c0_13 = arith.constant 0 : index
    %c0_14 = arith.constant 0 : index
    %c0_15 = arith.constant 0 : index
    %14 = vector.load %arg4[%c0_13, %c0_14, %c0_15] : memref<8x2x512xf32, #tpu.memory_space<vmem>>, vector<8x2x512xf32>
    tpu.vector_store %arg4[%c0_13, %c0_14, %c0_15], %13 {strides = array<i32>} : memref<8x2x512xf32, #tpu.memory_space<vmem>>, vector<8x2x512xf32>,
    return
  }
}

</mosaic_0001>

<bundles_post_ra>
// kernel: tpu_custom_call.1
= control target key start
LH: loop header
LB: loop body
LE: loop exit
PB: predicated region body
PF: predicated region fallthrough
CT: control target
= control target key end

     0   :  { %9 = vsyncpa [#allocation3], 0  ;;  %s3628_s0 = inlined_call_operand.vmem [shape: f32[8,2,128], index: 0, kind: input, shape index: {}]   ;;  %s3629_s1 = inlined_call_operand.vmem [shape: f32[8,2,1], index: 1, kind: input, shape index: {}]   ;;  %s3630_s2 = inlined_call_operand.hbm [shape: bf16[8,128,512], index: 2, kind: input, shape index: {}]   ;;  %s3631_s3 = inlined_call_operand.hbm [shape: f32[8,1,512], index: 3, kind: input, shape index: {}]   ;;  %s3632_s4 = inlined_call_operand.hbm [shape: f32[8,2,512], index: 4, kind: output, shape index: {}]  }
   0x1   :  { %10 = vsyncpa [#allocation6], 0 }
   0x2   :  { %11 = vsyncpa [#allocation4], 0  ;;  %s3440_s15 = smov [#allocation2]  }
   0x3   :  { %s21_s16 = sshll.u32 %s3440_s15, 4  ;;  %s22_s16 = int_to_ptr.vmem [resolvable:$true] %s21_s16 }
   0x4   :  { %s3382_s17 = scalar_lea.vmem %s22_s16, 32768  ;;  %p3387_p1 = scmp.lt.s32.totalorder %s22_s16, %s22_s16 }
   0x5   :  { %p3383_p0 = scmp.ne.s32.totalorder %s22_s16, %s3382_s17  ;;  %p3388_p2 = scmp.lt.s32.totalorder %s3382_s17, %s3382_s17 }
   0x7   :  { %p3389_p3 = por %p3388_p2, %p3387_p1 }
   0x9   :  { %p3390_p4 = pnand %p3389_p3, %p3383_p0 }
   0xb   :  { %3393 = shalt.err (!%p3390_p4)
}
   0xc   :  { %s3441_s18 = smov 256   ;;  %s3442_s19 = smov 16  }
   0xd   :  { %27 = dma.hbm_to_vmem [thread:$0]  %s3630_s2, 32768, %s22_s16, [#allocation3], %s3441_s18, %s3441_s18, %s3442_s19  }
   0xe   :  { %s3443_s22 = smov [#allocation5]  }
   0xf   :  { %s33_s23 = sshll.u32 %s3443_s22, 4  ;;  %s34_s23 = int_to_ptr.vmem [resolvable:$true] %s33_s23 }
  0x10   :  { %s3402_s24 = scalar_lea.vmem %s34_s23, 512  ;;  %p3407_p6 = scmp.lt.s32.totalorder %s34_s23, %s34_s23 }
  0x11   :  { %p3403_p5 = scmp.ne.s32.totalorder %s34_s23, %s3402_s24  ;;  %p3408_p7 = scmp.lt.s32.totalorder %s3402_s24, %s3402_s24 }
  0x13   :  { %p3409_p8 = por %p3408_p7, %p3407_p6 }
  0x15   :  { %p3410_p9 = pnand %p3409_p8, %p3403_p5 }
  0x17   :  { %3413 = shalt.err (!%p3410_p9)
}
  0x18   :  { %s3444_s25 = smov 64   ;;  %s3445_s26 = smov 4  }
  0x19   :  { %39 = dma.hbm_to_vmem [thread:$0]  %s3631_s3, 512, %s34_s23, [#allocation6], %s3444_s25, %s3444_s25, %s3445_s26  }
  0x1a   :  { %3434 = dma.done.wait [#allocation3], 32768  }
  0x1b   :  { %3435 = vsyncadd [#allocation3], 4294934528 }
  0x1c   :  { %3436 = dma.done.wait [#allocation6], 512  }
  0x1d   :  { %3437 = vsyncadd [#allocation6], 4294966784  ;;  %v3446_v0 = vmov 0   ;;  %v2990_v1 = vld [vmem:[#allocation2 + $0xe4] ss:$16 sps:$4 sm:$0xff]  }
  0x1e   :  { %687 = vmatprep.mubr.bf16.mxu0 %v3446_v0  ;;  %728 = vmatprep.mubr.bf16.mxu1 %v3446_v0  ;;  %v2992_v2 = vld [vmem:[#allocation2 + $0xec] ss:$16 sps:$4 sm:$0xff]   ;;  %v2994_v3 = vld [vmem:[#allocation2 + $0xe0] ss:$16 sps:$4 sm:$0xff]   ;;  %v2995_v4 = vld [vmem:[#allocation2 + $0xe8] ss:$16 sps:$4 sm:$0xff]  }
  0x1f   :  { %2988 = vset.pattern.permute.xlu0 %v3446_v0  ;;  %2989 = vset.pattern.permute.xlu1 %v3446_v0  ;;  %v2996_v5 = vld [vmem:[#allocation2 + $0xc4] ss:$16 sps:$4 sm:$0xff]   ;;  %v2998_v6 = vld [vmem:[#allocation2 + $0xcc] ss:$16 sps:$4 sm:$0xff]   ;;  %v3000_v7 = vld [vmem:[#allocation2 + $0xc0] ss:$16 sps:$4 sm:$0xff]  }
  0x20   :  { %655 = vmatprep.subr.bf16.mxu0 %v2990_v1  ;;  %696 = vmatprep.subr.bf16.mxu1 %v2992_v2  ;;  %v3001_v8 = vld [vmem:[#allocation2 + $0xc8] ss:$16 sps:$4 sm:$0xff]   ;;  %v3002_v9 = vld [vmem:[#allocation2 + $0xa4] ss:$16 sps:$4 sm:$0xff]   ;;  %v3004_v10 = vld [vmem:[#allocation2 + $0xac] ss:$16 sps:$4 sm:$0xff]  }
  0x21   :  { %656 = vmatpush1.bf16.msra.mxu0 %v2994_v3  ;;  %697 = vmatpush1.bf16.msra.mxu1 %v2995_v4  ;;  %v3006_v11 = vld [vmem:[#allocation2 + $0xa0] ss:$16 sps:$4 sm:$0xff]   ;;  %v3007_v12 = vld [vmem:[#allocation2 + $0xa8] ss:$16 sps:$4 sm:$0xff]   ;;  %v3008_v13 = vld [vmem:[#allocation2 + $0x84] ss:$16 sps:$4 sm:$0xff]  }
  0x22   :  { %657 = vmatprep.subr.bf16.mxu0 %v2996_v5  ;;  %698 = vmatprep.subr.bf16.mxu1 %v2998_v6  ;;  %v3010_v14 = vld [vmem:[#allocation2 + $0x8c] ss:$16 sps:$4 sm:$0xff]   ;;  %v3012_v15 = vld [vmem:[#allocation2 + $0x80] ss:$16 sps:$4 sm:$0xff]   ;;  %v3013_v16 = vld [vmem:[#allocation2 + $0x88] ss:$16 sps:$4 sm:$0xff]  }
  0x23   :  { %v3014_v17 = vld [vmem:[#allocation2 + $0x64] ss:$16 sps:$4 sm:$0xff]   ;;  %v3016_v18 = vld [vmem:[#allocation2 + $0x6c] ss:$16 sps:$4 sm:$0xff]   ;;  %v3018_v19 = vld [vmem:[#allocation2 + $0x60] ss:$16 sps:$4 sm:$0xff]  }
  0x24   :  { %v3019_v20 = vld [vmem:[#allocation2 + $0x68] ss:$16 sps:$4 sm:$0xff]   ;;  %v3020_v21 = vld [vmem:[#allocation2 + $0x44] ss:$16 sps:$4 sm:$0xff]   ;;  %v3022_v22 = vld [vmem:[#allocation2 + $0x4c] ss:$16 sps:$4 sm:$0xff]  }
  0x25   :  { %658 = vmatpush1.bf16.msra.mxu0 %v3000_v7  ;;  %699 = vmatpush1.bf16.msra.mxu1 %v3001_v8  ;;  %v3024_v23 = vld [vmem:[#allocation2 + $0x40] ss:$16 sps:$4 sm:$0xff]   ;;  %v3025_v24 = vld [vmem:[#allocation2 + $0x48] ss:$16 sps:$4 sm:$0xff]   ;;  %v3026_v25 = vld [vmem:[#allocation2 + $0x24] ss:$16 sps:$4 sm:$0xff]  }
  0x26   :  { %659 = vmatprep.subr.bf16.mxu0 %v3002_v9  ;;  %700 = vmatprep.subr.bf16.mxu1 %v3004_v10  ;;  %v3028_v26 = vld [vmem:[#allocation2 + $0x2c] ss:$16 sps:$4 sm:$0xff]   ;;  %v3030_v27 = vld [vmem:[#allocation2 + $0x20] ss:$16 sps:$4 sm:$0xff]   ;;  %v3031_v28 = vld [vmem:[#allocation2 + $0x28] ss:$16 sps:$4 sm:$0xff]  }
  0x27   :  { %v3032_v29 = vld [vmem:[#allocation2 + $0x4] ss:$16 sps:$4 sm:$0xff]   ;;  %v3034_v30 = vld [vmem:[#allocation2 + $0xc] ss:$16 sps:$4 sm:$0xff]   ;;  %v3036_v31 = vld [vmem:[#allocation2] ss:$16 sps:$4 sm:$0xff]  }
  0x28   :  { %v3037_v32 = vld [vmem:[#allocation2 + $0x8] ss:$16 sps:$4 sm:$0xff]   ;;  %v47_v33 = vld [vmem:[%s3628_s0] sm:$0x3]  ;;  %v3040_v34 = vld [vmem:[#allocation2 + $0x1e4] ss:$16 sps:$4 sm:$0xff]  }
  0x29   :  { %660 = vmatpush1.bf16.msra.mxu0 %v3006_v11  ;;  %701 = vmatpush1.bf16.msra.mxu1 %v3007_v12  ;;  %v3043_v35 = vld [vmem:[#allocation2 + $0x1ec] ss:$16 sps:$4 sm:$0xff]   ;;  %v55_v36 = vpack.c.bf16 %v47_v33, %v47_v33  ;;  %v3038_v37 = vld [vmem:[#allocation2 + $0x1e0] ss:$16 sps:$4 sm:$0xff]   ;;  %v3041_v38 = vld [vmem:[#allocation2 + $0x1e8] ss:$16 sps:$4 sm:$0xff]  }
  0x2a   :  { %661 = vmatprep.subr.bf16.mxu0 %v3008_v13  ;;  %702 = vmatprep.subr.bf16.mxu1 %v3010_v14  ;;  %v3046_v39 = vld [vmem:[#allocation2 + $0x1c4] ss:$16 sps:$4 sm:$0xff]   ;;  %v3049_v40 = vld [vmem:[#allocation2 + $0x1cc] ss:$16 sps:$4 sm:$0xff]   ;;  %v3044_v41 = vld [vmem:[#allocation2 + $0x1c0] ss:$16 sps:$4 sm:$0xff]  }
  0x2b   :  { %v3047_v42 = vld [vmem:[#allocation2 + $0x1c8] ss:$16 sps:$4 sm:$0xff]   ;;  %v3052_v43 = vld [vmem:[#allocation2 + $0x1a4] ss:$16 sps:$4 sm:$0xff]   ;;  %v3055_v44 = vld [vmem:[#allocation2 + $0x1ac] ss:$16 sps:$4 sm:$0xff]  }
  0x2c   :  { %v3050_v45 = vld [vmem:[#allocation2 + $0x1a0] ss:$16 sps:$4 sm:$0xff]   ;;  %v3053_v46 = vld [vmem:[#allocation2 + $0x1a8] ss:$16 sps:$4 sm:$0xff]   ;;  %v3058_v47 = vld [vmem:[#allocation2 + $0x184] ss:$16 sps:$4 sm:$0xff]  }
  0x2d   :  { %662 = vmatpush1.bf16.msra.mxu0 %v3012_v15  ;;  %703 = vmatpush1.bf16.msra.mxu1 %v3013_v16  ;;  %v3061_v48 = vld [vmem:[#allocation2 + $0x18c] ss:$16 sps:$4 sm:$0xff]   ;;  %v3056_v49 = vld [vmem:[#allocation2 + $0x180] ss:$16 sps:$4 sm:$0xff]   ;;  %v3059_v50 = vld [vmem:[#allocation2 + $0x188] ss:$16 sps:$4 sm:$0xff]  }
  0x2e   :  { %663 = vmatprep.subr.bf16.mxu0 %v3014_v17  ;;  %704 = vmatprep.subr.bf16.mxu1 %v3016_v18  ;;  %v3064_v51 = vld [vmem:[#allocation2 + $0x164] ss:$16 sps:$4 sm:$0xff]   ;;  %v3067_v52 = vld [vmem:[#allocation2 + $0x16c] ss:$16 sps:$4 sm:$0xff]   ;;  %v3062_v53 = vld [vmem:[#allocation2 + $0x160] ss:$16 sps:$4 sm:$0xff]  }
  0x2f   :  { %v3065_v54 = vld [vmem:[#allocation2 + $0x168] ss:$16 sps:$4 sm:$0xff]   ;;  %v3070_v55 = vld [vmem:[#allocation2 + $0x144] ss:$16 sps:$4 sm:$0xff]   ;;  %v3073_v56 = vld [vmem:[#allocation2 + $0x14c] ss:$16 sps:$4 sm:$0xff]  }
  0x30   :  { %v3068_v57 = vld [vmem:[#allocation2 + $0x140] ss:$16 sps:$4 sm:$0xff]   ;;  %v3071_v58 = vld [vmem:[#allocation2 + $0x148] ss:$16 sps:$4 sm:$0xff]   ;;  %v3076_v59 = vld [vmem:[#allocation2 + $0x124] ss:$16 sps:$4 sm:$0xff]  }
  0x31   :  { %664 = vmatpush1.bf16.msra.mxu0 %v3018_v19  ;;  %705 = vmatpush1.bf16.msra.mxu1 %v3019_v20  ;;  %v3079_v60 = vld [vmem:[#allocation2 + $0x12c] ss:$16 sps:$4 sm:$0xff]   ;;  %v3074_v61 = vld [vmem:[#allocation2 + $0x120] ss:$16 sps:$4 sm:$0xff]   ;;  %v3077_v62 = vld [vmem:[#allocation2 + $0x128] ss:$16 sps:$4 sm:$0xff]  }
  0x32   :  { %665 = vmatprep.subr.bf16.mxu0 %v3020_v21  ;;  %706 = vmatprep.subr.bf16.mxu1 %v3022_v22  ;;  %v3082_v63 = vld [vmem:[#allocation2 + $0x104] ss:$16 sps:$4 sm:$0xff]   ;;  %v3085_v1 = vld [vmem:[#allocation2 + $0x10c] ss:$16 sps:$4 sm:$0xff]   ;;  %v3080_v2 = vld [vmem:[#allocation2 + $0x100] ss:$16 sps:$4 sm:$0xff]  }
  0x33   :  { %v3083_v3 = vld [vmem:[#allocation2 + $0x108] ss:$16 sps:$4 sm:$0xff]   ;;  %v48_v4 = vld [vmem:[%s3628_s0 + $0x2] sm:$0x3]  ;;  %v3088_v5 = vld [vmem:[#allocation2 + $0x2e4] ss:$16 sps:$4 sm:$0xff]  }
  0x34   :  { %v3091_v6 = vld [vmem:[#allocation2 + $0x2ec] ss:$16 sps:$4 sm:$0xff]   ;;  %v56_v7 = vpack.c.bf16 %v48_v4, %v48_v4  ;;  %v3086_v8 = vld [vmem:[#allocation2 + $0x2e0] ss:$16 sps:$4 sm:$0xff]   ;;  %v3089_v9 = vld [vmem:[#allocation2 + $0x2e8] ss:$16 sps:$4 sm:$0xff]  }
  0x35   :  { %666 = vmatpush1.bf16.msra.mxu0 %v3024_v23  ;;  %707 = vmatpush1.bf16.msra.mxu1 %v3025_v24  ;;  %v3094_v10 = vld [vmem:[#allocation2 + $0x2c4] ss:$16 sps:$4 sm:$0xff]   ;;  %v3097_v11 = vld [vmem:[#allocation2 + $0x2cc] ss:$16 sps:$4 sm:$0xff]   ;;  %v3092_v12 = vld [vmem:[#allocation2 + $0x2c0] ss:$16 sps:$4 sm:$0xff]  }
  0x36   :  { %667 = vmatprep.subr.bf16.mxu0 %v3026_v25  ;;  %708 = vmatprep.subr.bf16.mxu1 %v3028_v26  ;;  %v3095_v13 = vld [vmem:[#allocation2 + $0x2c8] ss:$16 sps:$4 sm:$0xff]   ;;  %v3100_v14 = vld [vmem:[#allocation2 + $0x2a4] ss:$16 sps:$4 sm:$0xff]   ;;  %v3103_v15 = vld [vmem:[#allocation2 + $0x2ac] ss:$16 sps:$4 sm:$0xff]  }
  0x37   :  { %v2431_v16 = vld [vmem:[%s3629_s1] sm:$0x3]  ;;  %v3101_v18 = vld [vmem:[#allocation2 + $0x2a8] ss:$16 sps:$4 sm:$0xff]   ;;  %v3106_v19 = vld [vmem:[#allocation2 + $0x284] ss:$16 sps:$4 sm:$0xff]  }
  0x38   :  { %v3098_v17 = vld [vmem:[#allocation2 + $0x2a0] ss:$16 sps:$4 sm:$0xff]   ;;  %vm2439_vm0 = vcmp.gt.f32.partialorder %v2431_v16, 0.0  ;;  %v3109_v21 = vld [vmem:[#allocation2 + $0x28c] ss:$16 sps:$4 sm:$0xff]  }
  0x39   :  { %668 = vmatpush1.bf16.msra.mxu0 %v3030_v27  ;;  %709 = vmatpush1.bf16.msra.mxu1 %v3031_v28  ;;  %v2447_v20 = vsel %vm2439_vm0, 1, %v3446_v0  ;;  %v3104_v22 = vld [vmem:[#allocation2 + $0x280] ss:$16 sps:$4 sm:$0xff]   ;;  %v3107_v23 = vld [vmem:[#allocation2 + $0x288] ss:$16 sps:$4 sm:$0xff]  }
  0x3a   :  { %669 = vmatprep.subr.bf16.mxu0 %v3032_v29  ;;  %710 = vmatprep.subr.bf16.mxu1 %v3034_v30  ;;  %v3112_v24 = vld [vmem:[#allocation2 + $0x264] ss:$16 sps:$4 sm:$0xff]   ;;  %v3115_v25 = vld [vmem:[#allocation2 + $0x26c] ss:$16 sps:$4 sm:$0xff]   ;;  %v3110_v26 = vld [vmem:[#allocation2 + $0x260] ss:$16 sps:$4 sm:$0xff]  }
  0x3b   :  { %2456 = vperm.xlu0 %2988, %v2447_v20   ;;  %v3113_v27 = vld [vmem:[#allocation2 + $0x268] ss:$16 sps:$4 sm:$0xff]   ;;  %v3118_v28 = vld [vmem:[#allocation2 + $0x244] ss:$16 sps:$4 sm:$0xff]   ;;  %v3121_v29 = vld [vmem:[#allocation2 + $0x24c] ss:$16 sps:$4 sm:$0xff]  }
  0x3c   :  { %v3116_v30 = vld [vmem:[#allocation2 + $0x240] ss:$16 sps:$4 sm:$0xff]   ;;  %v3127_v33 = vld [vmem:[#allocation2 + $0x22c] ss:$16 sps:$4 sm:$0xff]   ;;  %v3184_v16 = vld [vmem:[#allocation2 + $0x4e4] ss:$16 sps:$4 sm:$0xff]  }
  0x3d   :  { %670 = vmatpush1.bf16.msra.mxu0 %v3036_v31  ;;  %711 = vmatpush1.bf16.msra.mxu1 %v3037_v32  ;;  %v3119_v31 = vld [vmem:[#allocation2 + $0x248] ss:$16 sps:$4 sm:$0xff]   ;;  %v3124_v32 = vld [vmem:[#allocation2 + $0x224] ss:$16 sps:$4 sm:$0xff]   ;;  %v3164_v4 = vld [vmem:[#allocation2 + $0x340] ss:$16 sps:$4 sm:$0xff]  }
  0x3e   :  { %897 = vmatprep.subr.bf16.mxu0 %v3040_v34  ;;  %938 = vmatprep.subr.bf16.mxu1 %v3043_v35  ;;  %v3122_v34 = vld [vmem:[#allocation2 + $0x220] ss:$16 sps:$4 sm:$0xff]   ;;  %v3125_v35 = vld [vmem:[#allocation2 + $0x228] ss:$16 sps:$4 sm:$0xff]  }
  0x3f   :  { %v3185_v20 = vld [vmem:[#allocation2 + $0x4e8] ss:$16 sps:$4 sm:$0xff]  }
  0x40   :  { %688 = vmatmul.mubr.bf16.vlgmr.msra.gmra.mxu0 %v55_v36  ;;  %729 = vmatmul.mubr.bf16.vlgmr.msra.gmra.mxu1 %v55_v36  ;;  %v3130_v36 = vld [vmem:[#allocation2 + $0x204] ss:$16 sps:$4 sm:$0xff]  }
  0x41   :  { %898 = vmatpush1.bf16.msra.mxu0 %v3038_v37  ;;  %939 = vmatpush1.bf16.msra.mxu1 %v3041_v38  ;;  %v3133_v37 = vld [vmem:[#allocation2 + $0x20c] ss:$16 sps:$4 sm:$0xff]   ;;  %v3128_v38 = vld [vmem:[#allocation2 + $0x200] ss:$16 sps:$4 sm:$0xff]  }
  0x42   :  { %899 = vmatprep.subr.bf16.mxu0 %v3046_v39  ;;  %940 = vmatprep.subr.bf16.mxu1 %v3049_v40  ;;  %v3131_v39 = vld [vmem:[#allocation2 + $0x208] ss:$16 sps:$4 sm:$0xff]   ;;  %v49_v40 = vld [vmem:[%s3628_s0 + $0x4] sm:$0x3] }
  0x43   :  { %929 = vmatprep.mubr.bf16.mxu0 %v3446_v0  ;;  %970 = vmatprep.mubr.bf16.mxu1 %v3446_v0 }
  0x45   :  { %900 = vmatpush1.bf16.msra.mxu0 %v3044_v41  ;;  %941 = vmatpush1.bf16.msra.mxu1 %v3047_v42  ;;  %v2432_v41 = vld [vmem:[%s3629_s1 + $0x2] sm:$0x3]  ;;  %v3136_v42 = vld [vmem:[#allocation2 + $0x3e4] ss:$16 sps:$4 sm:$0xff]  }
  0x46   :  { %901 = vmatprep.subr.bf16.mxu0 %v3052_v43  ;;  %942 = vmatprep.subr.bf16.mxu1 %v3055_v44  ;;  %v3139_v43 = vld [vmem:[#allocation2 + $0x3ec] ss:$16 sps:$4 sm:$0xff]   ;;  %vm2440_vm1 = vcmp.gt.f32.partialorder %v2432_v41, 0.0  ;;  %v3212_v41 = vld [vmem:[#allocation2 + $0x440] ss:$16 sps:$4 sm:$0xff]  }
  0x47   :  { %v2448_v44 = vsel %vm2440_vm1, 1, %v3446_v0 }
  0x48   :  { %2459 = vperm.xlu0 %2988, %v2448_v44   ;;  %v3223_v44 = vld [vmem:[#allocation2 + $0x42c] ss:$16 sps:$4 sm:$0xff]  }
  0x49   :  { %902 = vmatpush1.bf16.msra.mxu0 %v3050_v45  ;;  %943 = vmatpush1.bf16.msra.mxu1 %v3053_v46  ;;  %v57_v45 = vpack.c.bf16 %v49_v40, %v49_v40  ;;  %v3134_v46 = vld [vmem:[#allocation2 + $0x3e0] ss:$16 sps:$4 sm:$0xff]   ;;  %v3217_v40 = vld [vmem:[#allocation2 + $0x44c] ss:$16 sps:$4 sm:$0xff]  }
  0x4a   :  { %903 = vmatprep.subr.bf16.mxu0 %v3058_v47  ;;  %944 = vmatprep.subr.bf16.mxu1 %v3061_v48  ;;  %v3137_v47 = vld [vmem:[#allocation2 + $0x3e8] ss:$16 sps:$4 sm:$0xff]   ;;  %v3142_v48 = vld [vmem:[#allocation2 + $0x3c4] ss:$16 sps:$4 sm:$0xff]  }
  0x4d   :  { %904 = vmatpush1.bf16.msra.mxu0 %v3056_v49  ;;  %945 = vmatpush1.bf16.msra.mxu1 %v3059_v50  ;;  %v3145_v49 = vld [vmem:[#allocation2 + $0x3cc] ss:$16 sps:$4 sm:$0xff]   ;;  %v3140_v50 = vld [vmem:[#allocation2 + $0x3c0] ss:$16 sps:$4 sm:$0xff]  }
  0x4e   :  { %905 = vmatprep.subr.bf16.mxu0 %v3064_v51  ;;  %946 = vmatprep.subr.bf16.mxu1 %v3067_v52  ;;  %v3143_v51 = vld [vmem:[#allocation2 + $0x3c8] ss:$16 sps:$4 sm:$0xff]   ;;  %v3148_v52 = vld [vmem:[#allocation2 + $0x3a4] ss:$16 sps:$4 sm:$0xff]  }
  0x51   :  { %906 = vmatpush1.bf16.msra.mxu0 %v3062_v53  ;;  %947 = vmatpush1.bf16.msra.mxu1 %v3065_v54  ;;  %v3151_v53 = vld [vmem:[#allocation2 + $0x3ac] ss:$16 sps:$4 sm:$0xff]   ;;  %v3146_v54 = vld [vmem:[#allocation2 + $0x3a0] ss:$16 sps:$4 sm:$0xff]  }
  0x52   :  { %907 = vmatprep.subr.bf16.mxu0 %v3070_v55  ;;  %948 = vmatprep.subr.bf16.mxu1 %v3073_v56  ;;  %v3149_v55 = vld [vmem:[#allocation2 + $0x3a8] ss:$16 sps:$4 sm:$0xff]   ;;  %v3154_v56 = vld [vmem:[#allocation2 + $0x384] ss:$16 sps:$4 sm:$0xff]  }
  0x55   :  { %908 = vmatpush1.bf16.msra.mxu0 %v3068_v57  ;;  %949 = vmatpush1.bf16.msra.mxu1 %v3071_v58  ;;  %v3157_v57 = vld [vmem:[#allocation2 + $0x38c] ss:$16 sps:$4 sm:$0xff]   ;;  %v3152_v58 = vld [vmem:[#allocation2 + $0x380] ss:$16 sps:$4 sm:$0xff]  }
  0x56   :  { %909 = vmatprep.subr.bf16.mxu0 %v3076_v59  ;;  %950 = vmatprep.subr.bf16.mxu1 %v3079_v60  ;;  %v3155_v59 = vld [vmem:[#allocation2 + $0x388] ss:$16 sps:$4 sm:$0xff]   ;;  %v3160_v60 = vld [vmem:[#allocation2 + $0x364] ss:$16 sps:$4 sm:$0xff]  }
  0x59   :  { %910 = vmatpush1.bf16.msra.mxu0 %v3074_v61  ;;  %951 = vmatpush1.bf16.msra.mxu1 %v3077_v62  ;;  %v3163_v61 = vld [vmem:[#allocation2 + $0x36c] ss:$16 sps:$4 sm:$0xff]   ;;  %v3158_v62 = vld [vmem:[#allocation2 + $0x360] ss:$16 sps:$4 sm:$0xff]  }
  0x5a   :  { %911 = vmatprep.subr.bf16.mxu0 %v3082_v63  ;;  %952 = vmatprep.subr.bf16.mxu1 %v3085_v1  ;;  %v3161_v63 = vld [vmem:[#allocation2 + $0x368] ss:$16 sps:$4 sm:$0xff]   ;;  %v3166_v1 = vld [vmem:[#allocation2 + $0x344] ss:$16 sps:$4 sm:$0xff]  }
  0x5d   :  { %912 = vmatpush1.bf16.msra.mxu0 %v3080_v2  ;;  %953 = vmatpush1.bf16.msra.mxu1 %v3083_v3  ;;  %v3169_v2 = vld [vmem:[#allocation2 + $0x34c] ss:$16 sps:$4 sm:$0xff]   ;;  %v2433_v3 = vld [vmem:[%s3629_s1 + $0x4] sm:$0x3] }
  0x5e   :  { %1139 = vmatprep.subr.bf16.mxu0 %v3088_v5  ;;  %1180 = vmatprep.subr.bf16.mxu1 %v3091_v6  ;;  %v3167_v5 = vld [vmem:[#allocation2 + $0x348] ss:$16 sps:$4 sm:$0xff]   ;;  %vm2441_vm2 = vcmp.gt.f32.partialorder %v2433_v3, 0.0  ;;  %v3172_v6 = vld [vmem:[#allocation2 + $0x324] ss:$16 sps:$4 sm:$0xff]  }
  0x5f   :  { %v3245_v3 = vld [vmem:[#allocation2 + $0x5a8] ss:$16 sps:$4 sm:$0xff]  }
  0x60   :  { %930 = vmatmul.mubr.bf16.vlgmr.msra.gmra.mxu0 %v56_v7  ;;  %971 = vmatmul.mubr.bf16.vlgmr.msra.gmra.mxu1 %v56_v7  ;;  %v2449_v7 = vsel %vm2441_vm2, 1, %v3446_v0 }
  0x61   :  { %1140 = vmatpush1.bf16.msra.mxu0 %v3086_v8  ;;  %1181 = vmatpush1.bf16.msra.mxu1 %v3089_v9  ;;  %v3175_v8 = vld [vmem:[#allocation2 + $0x32c] ss:$16 sps:$4 sm:$0xff]   ;;  %v3170_v9 = vld [vmem:[#allocation2 + $0x320] ss:$16 sps:$4 sm:$0xff]  }
  0x62   :  { %1141 = vmatprep.subr.bf16.mxu0 %v3094_v10  ;;  %1182 = vmatprep.subr.bf16.mxu1 %v3097_v11  ;;  %v3173_v10 = vld [vmem:[#allocation2 + $0x328] ss:$16 sps:$4 sm:$0xff]   ;;  %v3178_v11 = vld [vmem:[#allocation2 + $0x304] ss:$16 sps:$4 sm:$0xff]  }
  0x63   :  { %1171 = vmatprep.mubr.bf16.mxu0 %v3446_v0  ;;  %1212 = vmatprep.mubr.bf16.mxu1 %v3446_v0 }
  0x64   :  { %2462 = vperm.xlu1 %2989, %v2449_v7   ;;  %v3251_v7 = vld [vmem:[#allocation2 + $0x588] ss:$16 sps:$4 sm:$0xff]  }
  0x65   :  { %1142 = vmatpush1.bf16.msra.mxu0 %v3092_v12  ;;  %1183 = vmatpush1.bf16.msra.mxu1 %v3095_v13  ;;  %v3181_v12 = vld [vmem:[#allocation2 + $0x30c] ss:$16 sps:$4 sm:$0xff]   ;;  %v3176_v13 = vld [vmem:[#allocation2 + $0x300] ss:$16 sps:$4 sm:$0xff]  }
  0x66   :  { %1143 = vmatprep.subr.bf16.mxu0 %v3100_v14  ;;  %1184 = vmatprep.subr.bf16.mxu1 %v3103_v15  ;;  %v3179_v14 = vld [vmem:[#allocation2 + $0x308] ss:$16 sps:$4 sm:$0xff]   ;;  %v50_v15 = vld [vmem:[%s3628_s0 + $0x6] sm:$0x3] }
  0x69   :  { %1144 = vmatpush1.bf16.msra.mxu0 %v3098_v17  ;;  %1185 = vmatpush1.bf16.msra.mxu1 %v3101_v18  ;;  %v3187_v17 = vld [vmem:[#allocation2 + $0x4ec] ss:$16 sps:$4 sm:$0xff]   ;;  %v58_v18 = vpack.c.bf16 %v50_v15, %v50_v15 }
  0x6a   :  { %1145 = vmatprep.subr.bf16.mxu0 %v3106_v19  ;;  %1186 = vmatprep.subr.bf16.mxu1 %v3109_v21  ;;  %v3182_v19 = vld [vmem:[#allocation2 + $0x4e0] ss:$16 sps:$4 sm:$0xff]   ;;  %v3190_v21 = vld [vmem:[#allocation2 + $0x4c4] ss:$16 sps:$4 sm:$0xff]   ;;  %v3265_v15 = vld [vmem:[#allocation2 + $0x54c] ss:$16 sps:$4 sm:$0xff]  }
  0x6d   :  { %1146 = vmatpush1.bf16.msra.mxu0 %v3104_v22  ;;  %1187 = vmatpush1.bf16.msra.mxu1 %v3107_v23  ;;  %v3193_v22 = vld [vmem:[#allocation2 + $0x4cc] ss:$16 sps:$4 sm:$0xff]   ;;  %v3188_v23 = vld [vmem:[#allocation2 + $0x4c0] ss:$16 sps:$4 sm:$0xff]  }
  0x6e   :  { %1147 = vmatprep.subr.bf16.mxu0 %v3112_v24  ;;  %1188 = vmatprep.subr.bf16.mxu1 %v3115_v25  ;;  %v3191_v24 = vld [vmem:[#allocation2 + $0x4c8] ss:$16 sps:$4 sm:$0xff]   ;;  %v3196_v25 = vld [vmem:[#allocation2 + $0x4a4] ss:$16 sps:$4 sm:$0xff]  }
  0x71   :  { %1148 = vmatpush1.bf16.msra.mxu0 %v3110_v26  ;;  %1189 = vmatpush1.bf16.msra.mxu1 %v3113_v27  ;;  %v3199_v26 = vld [vmem:[#allocation2 + $0x4ac] ss:$16 sps:$4 sm:$0xff]   ;;  %v3194_v27 = vld [vmem:[#allocation2 + $0x4a0] ss:$16 sps:$4 sm:$0xff]  }
  0x72   :  { %1149 = vmatprep.subr.bf16.mxu0 %v3118_v28  ;;  %1190 = vmatprep.subr.bf16.mxu1 %v3121_v29  ;;  %v3197_v28 = vld [vmem:[#allocation2 + $0x4a8] ss:$16 sps:$4 sm:$0xff]   ;;  %v2434_v29 = vld [vmem:[%s3629_s1 + $0x6] sm:$0x3] }
  0x73   :  { %vm2442_vm3 = vcmp.gt.f32.partialorder %v2434_v29, 0.0  ;;  %v3275_v29 = vld [vmem:[#allocation2 + $0x508] ss:$16 sps:$4 sm:$0xff]  }
  0x75   :  { %1150 = vmatpush1.bf16.msra.mxu0 %v3116_v30  ;;  %1191 = vmatpush1.bf16.msra.mxu1 %v3119_v31  ;;  %v3202_v30 = vld [vmem:[#allocation2 + $0x484] ss:$16 sps:$4 sm:$0xff]   ;;  %v3205_v31 = vld [vmem:[#allocation2 + $0x48c] ss:$16 sps:$4 sm:$0xff]  }
  0x76   :  { %1151 = vmatprep.subr.bf16.mxu0 %v3124_v32  ;;  %1192 = vmatprep.subr.bf16.mxu1 %v3127_v33  ;;  %v2450_v32 = vsel %vm2442_vm3, 1, %v3446_v0  ;;  %v3200_v33 = vld [vmem:[#allocation2 + $0x480] ss:$16 sps:$4 sm:$0xff]  }
  0x77   :  { %2465 = vperm.xlu1 %2989, %v2450_v32   ;;  %v3283_v32 = vld [vmem:[#allocation2 + $0x6ec] ss:$16 sps:$4 sm:$0xff]  }
  0x79   :  { %1152 = vmatpush1.bf16.msra.mxu0 %v3122_v34  ;;  %1193 = vmatpush1.bf16.msra.mxu1 %v3125_v35  ;;  %v3203_v34 = vld [vmem:[#allocation2 + $0x488] ss:$16 sps:$4 sm:$0xff]   ;;  %v3208_v35 = vld [vmem:[#allocation2 + $0x464] ss:$16 sps:$4 sm:$0xff]  }
  0x7a   :  { %1153 = vmatprep.subr.bf16.mxu0 %v3130_v36  ;;  %1194 = vmatprep.subr.bf16.mxu1 %v3133_v37  ;;  %v3211_v36 = vld [vmem:[#allocation2 + $0x46c] ss:$16 sps:$4 sm:$0xff]   ;;  %v3206_v37 = vld [vmem:[#allocation2 + $0x460] ss:$16 sps:$4 sm:$0xff]  }
  0x7d   :  { %1154 = vmatpush1.bf16.msra.mxu0 %v3128_v38  ;;  %1195 = vmatpush1.bf16.msra.mxu1 %v3131_v39  ;;  %v3209_v38 = vld [vmem:[#allocation2 + $0x468] ss:$16 sps:$4 sm:$0xff]   ;;  %v3214_v39 = vld [vmem:[#allocation2 + $0x444] ss:$16 sps:$4 sm:$0xff]  }
  0x7e   :  { %1381 = vmatprep.subr.bf16.mxu0 %v3136_v42  ;;  %1422 = vmatprep.subr.bf16.mxu1 %v3139_v43  ;;  %v3215_v42 = vld [vmem:[#allocation2 + $0x448] ss:$16 sps:$4 sm:$0xff]   ;;  %v3220_v43 = vld [vmem:[#allocation2 + $0x424] ss:$16 sps:$4 sm:$0xff]  }
  0x80   :  { %1172 = vmatmul.mubr.bf16.vlgmr.msra.gmra.mxu0 %v57_v45  ;;  %1213 = vmatmul.mubr.bf16.vlgmr.msra.gmra.mxu1 %v57_v45  ;;  %v3218_v45 = vld [vmem:[#allocation2 + $0x420] ss:$16 sps:$4 sm:$0xff]  }
  0x81   :  { %1382 = vmatpush1.bf16.msra.mxu0 %v3134_v46  ;;  %1423 = vmatpush1.bf16.msra.mxu1 %v3137_v47  ;;  %v3221_v46 = vld [vmem:[#allocation2 + $0x428] ss:$16 sps:$4 sm:$0xff]   ;;  %v3226_v47 = vld [vmem:[#allocation2 + $0x404] ss:$16 sps:$4 sm:$0xff]  }
  0x82   :  { %1383 = vmatprep.subr.bf16.mxu0 %v3142_v48  ;;  %1424 = vmatprep.subr.bf16.mxu1 %v3145_v49  ;;  %v3229_v48 = vld [vmem:[#allocation2 + $0x40c] ss:$16 sps:$4 sm:$0xff]   ;;  %v3224_v49 = vld [vmem:[#allocation2 + $0x400] ss:$16 sps:$4 sm:$0xff]  }
  0x83   :  { %1413 = vmatprep.mubr.bf16.mxu0 %v3446_v0  ;;  %1454 = vmatprep.mubr.bf16.mxu1 %v3446_v0 }
  0x85   :  { %1384 = vmatpush1.bf16.msra.mxu0 %v3140_v50  ;;  %1425 = vmatpush1.bf16.msra.mxu1 %v3143_v51  ;;  %v3227_v50 = vld [vmem:[#allocation2 + $0x408] ss:$16 sps:$4 sm:$0xff]  }
  0x86   :  { %1385 = vmatprep.subr.bf16.mxu0 %v3148_v52  ;;  %1426 = vmatprep.subr.bf16.mxu1 %v3151_v53  ;;  %v51_v51 = vld [vmem:[%s3628_s0 + $0x8] sm:$0x3]  ;;  %v3232_v52 = vld [vmem:[#allocation2 + $0x5e4] ss:$16 sps:$4 sm:$0xff]   ;;  %v3235_v53 = vld [vmem:[#allocation2 + $0x5ec] ss:$16 sps:$4 sm:$0xff]  }
  0x89   :  { %1386 = vmatpush1.bf16.msra.mxu0 %v3146_v54  ;;  %1427 = vmatpush1.bf16.msra.mxu1 %v3149_v55  ;;  %v2435_v54 = vld [vmem:[%s3629_s1 + $0x8] sm:$0x3]  ;;  %v59_v55 = vpack.c.bf16 %v51_v51, %v51_v51 }
  0x8a   :  { %1387 = vmatprep.subr.bf16.mxu0 %v3154_v56  ;;  %1428 = vmatprep.subr.bf16.mxu1 %v3157_v57  ;;  %v3230_v56 = vld [vmem:[#allocation2 + $0x5e0] ss:$16 sps:$4 sm:$0xff]   ;;  %vm2443_vm4 = vcmp.gt.f32.partialorder %v2435_v54, 0.0  ;;  %v3233_v57 = vld [vmem:[#allocation2 + $0x5e8] ss:$16 sps:$4 sm:$0xff]   ;;  %v335_v54 = vlaneseq }
  0x8b   :  { %v3305_v51 = vld [vmem:[#allocation2 + $0x668] ss:$16 sps:$4 sm:$0xff]  }
  0x8d   :  { %1388 = vmatpush1.bf16.msra.mxu0 %v3152_v58  ;;  %1429 = vmatpush1.bf16.msra.mxu1 %v3155_v59  ;;  %v2451_v58 = vsel %vm2443_vm4, 1, %v3446_v0  ;;  %v3238_v59 = vld [vmem:[#allocation2 + $0x5c4] ss:$16 sps:$4 sm:$0xff]  }
  0x8e   :  { %1389 = vmatprep.subr.bf16.mxu0 %v3160_v60  ;;  %1430 = vmatprep.subr.bf16.mxu1 %v3163_v61  ;;  %v3241_v60 = vld [vmem:[#allocation2 + $0x5cc] ss:$16 sps:$4 sm:$0xff]   ;;  %v3236_v61 = vld [vmem:[#allocation2 + $0x5c0] ss:$16 sps:$4 sm:$0xff]  }
  0x8f   :  { %2468 = vperm.xlu0 %2988, %v2451_v58   ;;  %v3319_v58 = vld [vmem:[#allocation2 + $0x62c] ss:$16 sps:$4 sm:$0xff]  }
  0x91   :  { %1390 = vmatpush1.bf16.msra.mxu0 %v3158_v62  ;;  %1431 = vmatpush1.bf16.msra.mxu1 %v3161_v63  ;;  %v3239_v62 = vld [vmem:[#allocation2 + $0x5c8] ss:$16 sps:$4 sm:$0xff]   ;;  %v3244_v63 = vld [vmem:[#allocation2 + $0x5a4] ss:$16 sps:$4 sm:$0xff]  }
  0x92   :  { %1391 = vmatprep.subr.bf16.mxu0 %v3166_v1  ;;  %1432 = vmatprep.subr.bf16.mxu1 %v3169_v2  ;;  %v3247_v1 = vld [vmem:[#allocation2 + $0x5ac] ss:$16 sps:$4 sm:$0xff]   ;;  %v3242_v2 = vld [vmem:[#allocation2 + $0x5a0] ss:$16 sps:$4 sm:$0xff]  }
  0x95   :  { %1392 = vmatpush1.bf16.msra.mxu0 %v3164_v4  ;;  %1433 = vmatpush1.bf16.msra.mxu1 %v3167_v5  ;;  %v3250_v4 = vld [vmem:[#allocation2 + $0x584] ss:$16 sps:$4 sm:$0xff]   ;;  %v3253_v5 = vld [vmem:[#allocation2 + $0x58c] ss:$16 sps:$4 sm:$0xff]  }
  0x96   :  { %1393 = vmatprep.subr.bf16.mxu0 %v3172_v6  ;;  %1434 = vmatprep.subr.bf16.mxu1 %v3175_v8  ;;  %v3248_v6 = vld [vmem:[#allocation2 + $0x580] ss:$16 sps:$4 sm:$0xff]   ;;  %v3256_v8 = vld [vmem:[#allocation2 + $0x564] ss:$16 sps:$4 sm:$0xff]  }
  0x99   :  { %1394 = vmatpush1.bf16.msra.mxu0 %v3170_v9  ;;  %1435 = vmatpush1.bf16.msra.mxu1 %v3173_v10  ;;  %v3259_v9 = vld [vmem:[#allocation2 + $0x56c] ss:$16 sps:$4 sm:$0xff]   ;;  %v3254_v10 = vld [vmem:[#allocation2 + $0x560] ss:$16 sps:$4 sm:$0xff]  }
  0x9a   :  { %1395 = vmatprep.subr.bf16.mxu0 %v3178_v11  ;;  %1436 = vmatprep.subr.bf16.mxu1 %v3181_v12  ;;  %v3257_v11 = vld [vmem:[#allocation2 + $0x568] ss:$16 sps:$4 sm:$0xff]  }
  0x9b   :  { %v2436_v12 = vld [vmem:[%s3629_s1 + $0xa] sm:$0x3] }
  0x9c   :  { %vm2444_vm5 = vcmp.gt.f32.partialorder %v2436_v12, 0.0  ;;  %v3447_v12 = vmov 1983009808  }
  0x9d   :  { %1396 = vmatpush1.bf16.msra.mxu0 %v3176_v13  ;;  %1437 = vmatpush1.bf16.msra.mxu1 %v3179_v14  ;;  %v3262_v13 = vld [vmem:[#allocation2 + $0x544] ss:$16 sps:$4 sm:$0xff]   ;;  %v2437_v14 = vld [vmem:[%s3629_s1 + $0xc] sm:$0x3] }
  0x9e   :  { %1623 = vmatprep.subr.bf16.mxu0 %v3184_v16  ;;  %1664 = vmatprep.subr.bf16.mxu1 %v3187_v17  ;;  %v2452_v16 = vsel %vm2444_vm5, 1, %v3446_v0  ;;  %v2438_v17 = vld [vmem:[%s3629_s1 + $0xe] sm:$0x3]  ;;  %vm2445_vm6 = vcmp.gt.f32.partialorder %v2437_v14, 0.0 }
  0x9f   :  { %2471 = vperm.xlu1 %2989, %v2452_v16   ;;  %vm2446_vm7 = vcmp.gt.f32.partialorder %v2438_v17, 0.0  ;;  %v3326_v16 = vld [vmem:[#allocation2 + $0x7e0] ss:$16 sps:$4 sm:$0xff]   ;;  %v3329_v17 = vld [vmem:[#allocation2 + $0x7e8] ss:$16 sps:$4 sm:$0xff]  }
  0xa0   :  { %1414 = vmatmul.mubr.bf16.vlgmr.msra.gmra.mxu0 %v58_v18  ;;  %1455 = vmatmul.mubr.bf16.vlgmr.msra.gmra.mxu1 %v58_v18  ;;  %v2453_v18 = vsel %vm2445_vm6, 1, %v3446_v0 }
  0xa1   :  { %1624 = vmatpush1.bf16.msra.mxu0 %v3182_v19  ;;  %1665 = vmatpush1.bf16.msra.mxu1 %v3185_v20  ;;  %v3260_v19 = vld [vmem:[#allocation2 + $0x540] ss:$16 sps:$4 sm:$0xff]   ;;  %v3263_v20 = vld [vmem:[#allocation2 + $0x548] ss:$16 sps:$4 sm:$0xff]  }
  0xa2   :  { %1625 = vmatprep.subr.bf16.mxu0 %v3190_v21  ;;  %1666 = vmatprep.subr.bf16.mxu1 %v3193_v22  ;;  %v2454_v21 = vsel %vm2446_vm7, 1, %v3446_v0  ;;  %v3268_v22 = vld [vmem:[#allocation2 + $0x524] ss:$16 sps:$4 sm:$0xff]  }
  0xa3   :  { %1655 = vmatprep.mubr.bf16.mxu0 %v3446_v0  ;;  %1696 = vmatprep.mubr.bf16.mxu1 %v3446_v0 }
  0xa4   :  { %2474 = vperm.xlu0 %2988, %v2453_v18   ;;  %2477 = vperm.xlu1 %2989, %v2454_v21  }
  0xa5   :  { %1626 = vmatpush1.bf16.msra.mxu0 %v3188_v23  ;;  %1667 = vmatpush1.bf16.msra.mxu1 %v3191_v24  ;;  %v3271_v23 = vld [vmem:[#allocation2 + $0x52c] ss:$16 sps:$4 sm:$0xff]   ;;  %v3266_v24 = vld [vmem:[#allocation2 + $0x520] ss:$16 sps:$4 sm:$0xff]  }
  0xa6   :  { %1627 = vmatprep.subr.bf16.mxu0 %v3196_v25  ;;  %1668 = vmatprep.subr.bf16.mxu1 %v3199_v26  ;;  %v3269_v25 = vld [vmem:[#allocation2 + $0x528] ss:$16 sps:$4 sm:$0xff]   ;;  %v3274_v26 = vld [vmem:[#allocation2 + $0x504] ss:$16 sps:$4 sm:$0xff]  }
  0xa9   :  { %1628 = vmatpush1.bf16.msra.mxu0 %v3194_v27  ;;  %1669 = vmatpush1.bf16.msra.mxu1 %v3197_v28  ;;  %v3277_v27 = vld [vmem:[#allocation2 + $0x50c] ss:$16 sps:$4 sm:$0xff]   ;;  %v3272_v28 = vld [vmem:[#allocation2 + $0x500] ss:$16 sps:$4 sm:$0xff]  }
  0xaa   :  { %1629 = vmatprep.subr.bf16.mxu0 %v3202_v30  ;;  %1670 = vmatprep.subr.bf16.mxu1 %v3205_v31  ;;  %v52_v30 = vld [vmem:[%s3628_s0 + $0xa] sm:$0x3]  ;;  %v3280_v31 = vld [vmem:[#allocation2 + $0x6e4] ss:$16 sps:$4 sm:$0xff]  }
  0xad   :  { %1630 = vmatpush1.bf16.msra.mxu0 %v3200_v33  ;;  %1671 = vmatpush1.bf16.msra.mxu1 %v3203_v34  ;;  %v60_v33 = vpack.c.bf16 %v52_v30, %v52_v30  ;;  %v3278_v34 = vld [vmem:[#allocation2 + $0x6e0] ss:$16 sps:$4 sm:$0xff]  }
  0xae   :  { %1631 = vmatprep.subr.bf16.mxu0 %v3208_v35  ;;  %1672 = vmatprep.subr.bf16.mxu1 %v3211_v36  ;;  %v3281_v35 = vld [vmem:[#allocation2 + $0x6e8] ss:$16 sps:$4 sm:$0xff]   ;;  %v3286_v36 = vld [vmem:[#allocation2 + $0x6c4] ss:$16 sps:$4 sm:$0xff]  }
  0xb1   :  { %1632 = vmatpush1.bf16.msra.mxu0 %v3206_v37  ;;  %1673 = vmatpush1.bf16.msra.mxu1 %v3209_v38  ;;  %v3289_v37 = vld [vmem:[#allocation2 + $0x6cc] ss:$16 sps:$4 sm:$0xff]   ;;  %v3284_v38 = vld [vmem:[#allocation2 + $0x6c0] ss:$16 sps:$4 sm:$0xff]  }
  0xb2   :  { %1633 = vmatprep.subr.bf16.mxu0 %v3214_v39  ;;  %1674 = vmatprep.subr.bf16.mxu1 %v3217_v40  ;;  %v3287_v39 = vld [vmem:[#allocation2 + $0x6c8] ss:$16 sps:$4 sm:$0xff]   ;;  %v3292_v40 = vld [vmem:[#allocation2 + $0x6a4] ss:$16 sps:$4 sm:$0xff]  }
  0xb5   :  { %1634 = vmatpush1.bf16.msra.mxu0 %v3212_v41  ;;  %1675 = vmatpush1.bf16.msra.mxu1 %v3215_v42  ;;  %v3295_v41 = vld [vmem:[#allocation2 + $0x6ac] ss:$16 sps:$4 sm:$0xff]   ;;  %v3290_v42 = vld [vmem:[#allocation2 + $0x6a0] ss:$16 sps:$4 sm:$0xff]  }
  0xb6   :  { %1635 = vmatprep.subr.bf16.mxu0 %v3220_v43  ;;  %1676 = vmatprep.subr.bf16.mxu1 %v3223_v44  ;;  %v3293_v43 = vld [vmem:[#allocation2 + $0x6a8] ss:$16 sps:$4 sm:$0xff]   ;;  %v3298_v44 = vld [vmem:[#allocation2 + $0x684] ss:$16 sps:$4 sm:$0xff]   ;;  %v2457_v18 = vpop.permute.xlu0 %2456 }
  0xb7   :  { %vm2479_vm8 = vcmp.eq.s32.totalorder %v2457_v18, 1 }
  0xb9   :  { %1636 = vmatpush1.bf16.msra.mxu0 %v3218_v45  ;;  %1677 = vmatpush1.bf16.msra.mxu1 %v3221_v46  ;;  %v3301_v45 = vld [vmem:[#allocation2 + $0x68c] ss:$16 sps:$4 sm:$0xff]   ;;  %v3296_v46 = vld [vmem:[#allocation2 + $0x680] ss:$16 sps:$4 sm:$0xff]  }
  0xba   :  { %1637 = vmatprep.subr.bf16.mxu0 %v3226_v47  ;;  %1678 = vmatprep.subr.bf16.mxu1 %v3229_v48  ;;  %v3299_v47 = vld [vmem:[#allocation2 + $0x688] ss:$16 sps:$4 sm:$0xff]   ;;  %v3304_v48 = vld [vmem:[#allocation2 + $0x664] ss:$16 sps:$4 sm:$0xff]  }
  0xbd   :  { %1638 = vmatpush1.bf16.msra.mxu0 %v3224_v49  ;;  %1679 = vmatpush1.bf16.msra.mxu1 %v3227_v50  ;;  %v3307_v49 = vld [vmem:[#allocation2 + $0x66c] ss:$16 sps:$4 sm:$0xff]   ;;  %v3302_v50 = vld [vmem:[#allocation2 + $0x660] ss:$16 sps:$4 sm:$0xff]  }
  0xbe   :  { %1865 = vmatprep.subr.bf16.mxu0 %v3232_v52  ;;  %1906 = vmatprep.subr.bf16.mxu1 %v3235_v53  ;;  %v3310_v52 = vld [vmem:[#allocation2 + $0x644] ss:$16 sps:$4 sm:$0xff]   ;;  %v3313_v53 = vld [vmem:[#allocation2 + $0x64c] ss:$16 sps:$4 sm:$0xff]  }
  0xc0   :  { %1656 = vmatmul.mubr.bf16.vlgmr.msra.gmra.mxu0 %v59_v55  ;;  %1697 = vmatmul.mubr.bf16.vlgmr.msra.gmra.mxu1 %v59_v55  ;;  %v3308_v55 = vld [vmem:[#allocation2 + $0x640] ss:$16 sps:$4 sm:$0xff]  }
  0xc1   :  { %1866 = vmatpush1.bf16.msra.mxu0 %v3230_v56  ;;  %1907 = vmatpush1.bf16.msra.mxu1 %v3233_v57  ;;  %v3311_v56 = vld [vmem:[#allocation2 + $0x648] ss:$16 sps:$4 sm:$0xff]   ;;  %v3316_v57 = vld [vmem:[#allocation2 + $0x624] ss:$16 sps:$4 sm:$0xff]  }
  0xc2   :  { %1867 = vmatprep.subr.bf16.mxu0 %v3238_v59  ;;  %1908 = vmatprep.subr.bf16.mxu1 %v3241_v60  ;;  %v3548_v59 = vshrl.u32 %v335_v54, 7  ;;  %v3314_v60 = vld [vmem:[#allocation2 + $0x620] ss:$16 sps:$4 sm:$0xff]  }
  0xc3   :  { %1897 = vmatprep.mubr.bf16.mxu0 %v3446_v0  ;;  %1938 = vmatprep.mubr.bf16.mxu1 %v3446_v0 }
  0xc5   :  { %1868 = vmatpush1.bf16.msra.mxu0 %v3236_v61  ;;  %1909 = vmatpush1.bf16.msra.mxu1 %v3239_v62  ;;  %v3317_v61 = vld [vmem:[#allocation2 + $0x628] ss:$16 sps:$4 sm:$0xff]   ;;  %v3322_v62 = vld [vmem:[#allocation2 + $0x604] ss:$16 sps:$4 sm:$0xff]  }
  0xc6   :  { %1869 = vmatprep.subr.bf16.mxu0 %v3244_v63  ;;  %1910 = vmatprep.subr.bf16.mxu1 %v3247_v1  ;;  %v3325_v63 = vld [vmem:[#allocation2 + $0x60c] ss:$16 sps:$4 sm:$0xff]   ;;  %v3551_v1 = vsub.s32 0, %v3548_v59 }
  0xc9   :  { %1870 = vmatpush1.bf16.msra.mxu0 %v3242_v2  ;;  %1911 = vmatpush1.bf16.msra.mxu1 %v3245_v3  ;;  %v3554_v2 = vsub.s32 2, %v3548_v59  ;;  %v3320_v3 = vld [vmem:[#allocation2 + $0x600] ss:$16 sps:$4 sm:$0xff]  }
  0xca   :  { %1871 = vmatprep.subr.bf16.mxu0 %v3250_v4  ;;  %1912 = vmatprep.subr.bf16.mxu1 %v3253_v5  ;;  %v3323_v4 = vld [vmem:[#allocation2 + $0x608] ss:$16 sps:$4 sm:$0xff]   ;;  %v53_v5 = vld [vmem:[%s3628_s0 + $0xc] sm:$0x3] }
  0xcd   :  { %1872 = vmatpush1.bf16.msra.mxu0 %v3248_v6  ;;  %1913 = vmatpush1.bf16.msra.mxu1 %v3251_v7  ;;  %v319_v6 = vld [vmem:[#allocation5] sm:$0xf]  ;;  %v3328_v7 = vld [vmem:[#allocation2 + $0x7e4] ss:$16 sps:$4 sm:$0xff]  }
  0xce   :  { %1873 = vmatprep.subr.bf16.mxu0 %v3256_v8  ;;  %1914 = vmatprep.subr.bf16.mxu1 %v3259_v9  ;;  %v3331_v8 = vld [vmem:[#allocation2 + $0x7ec] ss:$16 sps:$4 sm:$0xff]   ;;  %v3560_v9 = vsub.s32 1, %v3548_v59  ;;  %v338_v14 = vrot.slane %v319_v6, %v3551_v1 }
  0xd0   :  { %v342_v21 = vrot.slane %v319_v6, %v3560_v9 }
  0xd1   :  { %1874 = vmatpush1.bf16.msra.mxu0 %v3254_v10  ;;  %1915 = vmatpush1.bf16.msra.mxu1 %v3257_v11  ;;  %v3563_v10 = vsub.s32 3, %v3548_v59  ;;  %v61_v11 = vpack.c.bf16 %v53_v5, %v53_v5  ;;  %v3365_v5 = vld [vmem:[#allocation2 + $0x728] ss:$16 sps:$4 sm:$0xff]  }
  0xd2   :  { %1875 = vmatprep.subr.bf16.mxu0 %v3262_v13  ;;  %1916 = vmatprep.subr.bf16.mxu1 %v3265_v15  ;;  %v2554_v13 = vunpack.c.l.s4 %v3447_v12  ;;  %v346_v15 = vrot.slane %v319_v6, %v3554_v2  ;;  %v54_v12 = vld [vmem:[%s3628_s0 + $0xe] sm:$0x3]  ;;  %s3448_s0 = smov [#allocation7]  }
  0xd3   :  { %s2708_s30 = sshll.u32 %s3448_s0, 4  ;;  %s2709_s30 = int_to_ptr.vmem [resolvable:$true] %s2708_s30 }
  0xd4   :  { %s3414_s5 = scalar_lea.vmem %s2709_s30, 1024  ;;  %p3419_p11 = scmp.lt.s32.totalorder %s2709_s30, %s2709_s30 }
  0xd5   :  { %1876 = vmatpush1.bf16.msra.mxu0 %v3260_v19  ;;  %1917 = vmatpush1.bf16.msra.mxu1 %v3263_v20  ;;  %v3334_v19 = vld [vmem:[#allocation2 + $0x7c4] ss:$16 sps:$4 sm:$0xff]   ;;  %v3337_v20 = vld [vmem:[#allocation2 + $0x7cc] ss:$16 sps:$4 sm:$0xff]   ;;  %p3415_p10 = scmp.ne.s32.totalorder %s2709_s30, %s3414_s5  ;;  %p3420_p12 = scmp.lt.s32.totalorder %s3414_s5, %s3414_s5 }
  0xd6   :  { %1877 = vmatprep.subr.bf16.mxu0 %v3268_v22  ;;  %1918 = vmatprep.subr.bf16.mxu1 %v3271_v23  ;;  %v350_v22 = vrot.slane %v319_v6, %v3563_v10  ;;  %v3370_v6 = vld [vmem:[#allocation2 + $0x704] ss:$16 sps:$4 sm:$0xff]  }
  0xd7   :  { %p3421_p13 = por %p3420_p12, %p3419_p11 }
  0xd9   :  { %1878 = vmatpush1.bf16.msra.mxu0 %v3266_v24  ;;  %1919 = vmatpush1.bf16.msra.mxu1 %v3269_v25  ;;  %v2555_v25 = vunpack.c.0.s8 %v2554_v13  ;;  %v320_v13 = vld [vmem:[#allocation5 + $0x4] sm:$0xf]  ;;  %p3422_p0 = pnand %p3421_p13, %p3415_p10 }
  0xda   :  { %1879 = vmatprep.subr.bf16.mxu0 %v3274_v26  ;;  %1920 = vmatprep.subr.bf16.mxu1 %v3277_v27  ;;  %v358_v18 = vrot.slane %v320_v13, %v3560_v9 }
  0xdd   :  { %1880 = vmatpush1.bf16.msra.mxu0 %v3272_v28  ;;  %1921 = vmatpush1.bf16.msra.mxu1 %v3275_v29  ;;  %v3332_v28 = vld [vmem:[#allocation2 + $0x7c0] ss:$16 sps:$4 sm:$0xff]   ;;  %v3335_v29 = vld [vmem:[#allocation2 + $0x7c8] ss:$16 sps:$4 sm:$0xff]  }
  0xde   :  { %2107 = vmatprep.subr.bf16.mxu0 %v3280_v31  ;;  %2148 = vmatprep.subr.bf16.mxu1 %v3283_v32  ;;  %v3340_v32 = vld [vmem:[#allocation2 + $0x7a4] ss:$16 sps:$4 sm:$0xff]  }
  0xe0   :  { %1898 = vmatmul.mubr.bf16.vlgmr.msra.gmra.mxu0 %v60_v33  ;;  %1939 = vmatmul.mubr.bf16.vlgmr.msra.gmra.mxu1 %v60_v33  ;;  %v3343_v33 = vld [vmem:[#allocation2 + $0x7ac] ss:$16 sps:$4 sm:$0xff]  }
  0xe1   :  { %2108 = vmatpush1.bf16.msra.mxu0 %v3278_v34  ;;  %2149 = vmatpush1.bf16.msra.mxu1 %v3281_v35 }
  0xe2   :  { %2109 = vmatprep.subr.bf16.mxu0 %v3286_v36  ;;  %2150 = vmatprep.subr.bf16.mxu1 %v3289_v37 }
  0xe3   :  { %2139 = vmatprep.mubr.bf16.mxu0 %v3446_v0  ;;  %2180 = vmatprep.mubr.bf16.mxu1 %v3446_v0 }
  0xe5   :  { %2110 = vmatpush1.bf16.msra.mxu0 %v3284_v38  ;;  %2151 = vmatpush1.bf16.msra.mxu1 %v3287_v39  ;;  %v3574_v38 = vsub.s32 %v2555_v25, %v3548_v59  ;;  %v3358_v59 = vld [vmem:[#allocation2 + $0x744] ss:$16 sps:$4 sm:$0xff]  }
  0xe6   :  { %2111 = vmatprep.subr.bf16.mxu0 %v3292_v40  ;;  %2152 = vmatprep.subr.bf16.mxu1 %v3295_v41 }
  0xe9   :  { %2112 = vmatpush1.bf16.msra.mxu0 %v3290_v42  ;;  %2153 = vmatpush1.bf16.msra.mxu1 %v3293_v43  ;;  %v3338_v43 = vld [vmem:[#allocation2 + $0x7a0] ss:$16 sps:$4 sm:$0xff]  }
  0xea   :  { %2113 = vmatprep.subr.bf16.mxu0 %v3298_v44  ;;  %2154 = vmatprep.subr.bf16.mxu1 %v3301_v45  ;;  %v3341_v44 = vld [vmem:[#allocation2 + $0x7a8] ss:$16 sps:$4 sm:$0xff]  }
  0xed   :  { %2114 = vmatpush1.bf16.msra.mxu0 %v3296_v46  ;;  %2155 = vmatpush1.bf16.msra.mxu1 %v3299_v47 }
  0xee   :  { %2115 = vmatprep.subr.bf16.mxu0 %v3304_v48  ;;  %2156 = vmatprep.subr.bf16.mxu1 %v3307_v49  ;;  %v3349_v49 = vld [vmem:[#allocation2 + $0x78c] ss:$16 sps:$4 sm:$0xff]  }
  0xf1   :  { %2116 = vmatpush1.bf16.msra.mxu0 %v3302_v50  ;;  %2157 = vmatpush1.bf16.msra.mxu1 %v3305_v51 }
  0xf2   :  { %2117 = vmatprep.subr.bf16.mxu0 %v3310_v52  ;;  %2158 = vmatprep.subr.bf16.mxu1 %v3313_v53  ;;  %v3344_v52 = vld [vmem:[#allocation2 + $0x780] ss:$16 sps:$4 sm:$0xff]   ;;  %v3347_v53 = vld [vmem:[#allocation2 + $0x788] ss:$16 sps:$4 sm:$0xff]  }
  0xf5   :  { %2118 = vmatpush1.bf16.msra.mxu0 %v3308_v55  ;;  %2159 = vmatpush1.bf16.msra.mxu1 %v3311_v56  ;;  %v3352_v55 = vld [vmem:[#allocation2 + $0x764] ss:$16 sps:$4 sm:$0xff]   ;;  %v3355_v56 = vld [vmem:[#allocation2 + $0x76c] ss:$16 sps:$4 sm:$0xff]  }
  0xf6   :  { %2119 = vmatprep.subr.bf16.mxu0 %v3316_v57  ;;  %2160 = vmatprep.subr.bf16.mxu1 %v3319_v58  ;;  %v3350_v57 = vld [vmem:[#allocation2 + $0x760] ss:$16 sps:$4 sm:$0xff]   ;;  %v3353_v58 = vld [vmem:[#allocation2 + $0x768] ss:$16 sps:$4 sm:$0xff]  }
  0xf9   :  { %2120 = vmatpush1.bf16.msra.mxu0 %v3314_v60  ;;  %2161 = vmatpush1.bf16.msra.mxu1 %v3317_v61  ;;  %v3361_v60 = vld [vmem:[#allocation2 + $0x74c] ss:$16 sps:$4 sm:$0xff]   ;;  %v3356_v61 = vld [vmem:[#allocation2 + $0x740] ss:$16 sps:$4 sm:$0xff]  }
  0xfa   :  { %2121 = vmatprep.subr.bf16.mxu0 %v3322_v62  ;;  %2162 = vmatprep.subr.bf16.mxu1 %v3325_v63  ;;  %v3359_v62 = vld [vmem:[#allocation2 + $0x748] ss:$16 sps:$4 sm:$0xff]   ;;  %v3364_v63 = vld [vmem:[#allocation2 + $0x724] ss:$16 sps:$4 sm:$0xff]  }
  0xfd   :  { %2122 = vmatpush1.bf16.msra.mxu0 %v3320_v3  ;;  %2163 = vmatpush1.bf16.msra.mxu1 %v3323_v4  ;;  %v3367_v3 = vld [vmem:[#allocation2 + $0x72c] ss:$16 sps:$4 sm:$0xff]   ;;  %v3362_v4 = vld [vmem:[#allocation2 + $0x720] ss:$16 sps:$4 sm:$0xff]  }
  0xfe   :  { %2349 = vmatprep.subr.bf16.mxu0 %v3328_v7  ;;  %2390 = vmatprep.subr.bf16.mxu1 %v3331_v8  ;;  %v3373_v7 = vld [vmem:[#allocation2 + $0x70c] ss:$16 sps:$4 sm:$0xff]   ;;  %v3368_v8 = vld [vmem:[#allocation2 + $0x700] ss:$16 sps:$4 sm:$0xff]  }
 0x100   :  { %v689_v23 = vpop.f32.mrf.mxu0  ;;  %v730_v24 = vpop.f32.mrf.mxu1  ;;  %2140 = vmatmul.mubr.bf16.vlgmr.msra.gmra.mxu0 %v61_v11  ;;  %2181 = vmatmul.mubr.bf16.vlgmr.msra.gmra.mxu1 %v61_v11  ;;  %v3371_v11 = vld [vmem:[#allocation2 + $0x708] ss:$16 sps:$4 sm:$0xff]  }
 0x101   :  { %v690_v26 = vadd.f32 %v689_v23, %v338_v14  ;;  %v731_v27 = vadd.f32 %v730_v24, %v346_v15  ;;  %2350 = vmatpush1.bf16.msra.mxu0 %v3326_v16  ;;  %2391 = vmatpush1.bf16.msra.mxu1 %v3329_v17  ;;  %v62_v14 = vpack.c.bf16 %v54_v12, %v54_v12  ;;  %v2460_v17 = vpop.permute.xlu0 %2459 }
 0x102   :  { %v691_v30 = vpop.f32.mrf.mxu0  ;;  %v732_v31 = vpop.f32.mrf.mxu1  ;;  %2351 = vmatprep.subr.bf16.mxu0 %v3334_v19  ;;  %2392 = vmatprep.subr.bf16.mxu1 %v3337_v20  ;;  %v354_v15 = vrot.slane %v320_v13, %v3551_v1  ;;  %v362_v16 = vrot.slane %v320_v13, %v3554_v2  ;;  %v366_v19 = vrot.slane %v320_v13, %v3563_v10  ;;  %vm2480_vm9 = vcmp.eq.s32.totalorder %v2460_v17, 1 }
 0x103   :  { %v692_v34 = vadd.f32 %v691_v30, %v342_v21  ;;  %v2487_v35 = vsel %vm2479_vm8, 15.0, %v690_v26  ;;  %v733_v36 = vadd.f32 %v732_v31, %v350_v22  ;;  %v2489_v37 = vsel %vm2479_vm8, 15.0, %v731_v27  ;;  %2381 = vmatprep.mubr.bf16.mxu0 %v3446_v0  ;;  %2422 = vmatprep.mubr.bf16.mxu1 %v3446_v0  ;;  %v3346_v0 = vld [vmem:[#allocation2 + $0x784] ss:$16 sps:$4 sm:$0xff]  }
 0x104   :  { %v693_v39 = vpop.f32.mrf.mxu0  ;;  %v734_v40 = vpop.f32.mrf.mxu1 }
 0x105   :  { %v2488_v41 = vsel %vm2479_vm8, 15.0, %v692_v34  ;;  %v2490_v42 = vsel %vm2479_vm8, 15.0, %v733_v36  ;;  %2352 = vmatpush1.bf16.msra.mxu0 %v3332_v28  ;;  %2393 = vmatpush1.bf16.msra.mxu1 %v3335_v29 }
 0x106   :  { %v2551_v45 = vcombine.low %v2487_v35, %v2488_v41  ;;  %v2552_v46 = vcombine.low %v2489_v37, %v2490_v42  ;;  %v694_v47 = vpop.f32.mrf.mxu0  ;;  %v735_v48 = vpop.f32.mrf.mxu1  ;;  %2353 = vmatprep.subr.bf16.mxu0 %v3340_v32  ;;  %2394 = vmatprep.subr.bf16.mxu1 %v3343_v33  ;;  %v321_v42 = vld [vmem:[#allocation5 + $0x8] sm:$0xf] }
 0x107   :  { %v382_v47 = vrot.slane %v321_v42, %v3563_v10 }
 0x108   :  { %v2559_v50 = vrot.slane %v2551_v45, %v3574_v38  ;;  %v2566_v51 = vrot.slane %v2552_v46, %v3574_v38  ;;  %v2463_v45 = vpop.permute.xlu1 %2462  ;;  %v374_v46 = vrot.slane %v321_v42, %v3560_v9 }
 0x109   :  { %2354 = vmatpush1.bf16.msra.mxu0 %v3338_v43  ;;  %2395 = vmatpush1.bf16.msra.mxu1 %v3341_v44  ;;  %v370_v43 = vrot.slane %v321_v42, %v3551_v1  ;;  %v378_v44 = vrot.slane %v321_v42, %v3554_v2  ;;  %vm2481_vm10 = vcmp.eq.s32.totalorder %v2463_v45, 1 }
 0x10a   :  { %v2567_v54 = vcombine.low %v2559_v50, %v2566_v51  ;;  %2355 = vmatprep.subr.bf16.mxu0 %v3346_v0  ;;  %2396 = vmatprep.subr.bf16.mxu1 %v3349_v49 }
 0x10c   :  { %2695 = vst [vmem:[#allocation7] sm:$0xff] %v2567_v54  ;;  %v2466_v12 = vpop.permute.xlu1 %2465 }
 0x10d   :  { %2356 = vmatpush1.bf16.msra.mxu0 %v3344_v52  ;;  %2397 = vmatpush1.bf16.msra.mxu1 %v3347_v53  ;;  %vm2482_vm11 = vcmp.eq.s32.totalorder %v2466_v12, 1 }
 0x10e   :  { %2357 = vmatprep.subr.bf16.mxu0 %v3352_v55  ;;  %2398 = vmatprep.subr.bf16.mxu1 %v3355_v56 }
 0x111   :  { %2358 = vmatpush1.bf16.msra.mxu0 %v3350_v57  ;;  %2399 = vmatpush1.bf16.msra.mxu1 %v3353_v58 }
 0x112   :  { %2359 = vmatprep.subr.bf16.mxu0 %v3358_v59  ;;  %2400 = vmatprep.subr.bf16.mxu1 %v3361_v60 }
 0x115   :  { %2360 = vmatpush1.bf16.msra.mxu0 %v3356_v61  ;;  %2401 = vmatpush1.bf16.msra.mxu1 %v3359_v62 }
 0x116   :  { %2361 = vmatprep.subr.bf16.mxu0 %v3364_v63  ;;  %2402 = vmatprep.subr.bf16.mxu1 %v3367_v3 }
 0x119   :  { %2362 = vmatpush1.bf16.msra.mxu0 %v3362_v4  ;;  %2403 = vmatpush1.bf16.msra.mxu1 %v3365_v5 }
 0x11a   :  { %2363 = vmatprep.subr.bf16.mxu0 %v3370_v6  ;;  %2404 = vmatprep.subr.bf16.mxu1 %v3373_v7  ;;  %v322_v7 = vld [vmem:[#allocation5 + $0xc] sm:$0xf] }
 0x11b   :  { %v390_v13 = vrot.slane %v322_v7, %v3560_v9 }
 0x11d   :  { %2364 = vmatpush1.bf16.msra.mxu0 %v3368_v8  ;;  %2405 = vmatpush1.bf16.msra.mxu1 %v3371_v11  ;;  %v386_v8 = vrot.slane %v322_v7, %v3551_v1  ;;  %v394_v11 = vrot.slane %v322_v7, %v3554_v2 }
 0x120   :  { %v931_v20 = vpop.f32.mrf.mxu0  ;;  %v972_v21 = vpop.f32.mrf.mxu1  ;;  %2382 = vmatmul.mubr.bf16.vlgmr.msra.gmra.mxu0 %v62_v14  ;;  %2423 = vmatmul.mubr.bf16.vlgmr.msra.gmra.mxu1 %v62_v14  ;;  %v398_v14 = vrot.slane %v322_v7, %v3563_v10 }
 0x121   :  { %v932_v22 = vadd.f32 %v931_v20, %v354_v15  ;;  %v973_v23 = vadd.f32 %v972_v21, %v362_v16 }
 0x122   :  { %v933_v24 = vpop.f32.mrf.mxu0  ;;  %v974_v25 = vpop.f32.mrf.mxu1 }
 0x123   :  { %v934_v26 = vadd.f32 %v933_v24, %v358_v18  ;;  %v2491_v27 = vsel %vm2480_vm9, 15.0, %v932_v22  ;;  %v975_v28 = vadd.f32 %v974_v25, %v366_v19  ;;  %v2493_v29 = vsel %vm2480_vm9, 15.0, %v973_v23 }
 0x124   :  { %v935_v30 = vpop.f32.mrf.mxu0  ;;  %v976_v31 = vpop.f32.mrf.mxu1 }
 0x125   :  { %v2492_v32 = vsel %vm2480_vm9, 15.0, %v934_v26  ;;  %v2494_v33 = vsel %vm2480_vm9, 15.0, %v975_v28 }
 0x126   :  { %v2568_v34 = vcombine.low %v2491_v27, %v2492_v32  ;;  %v2569_v35 = vcombine.low %v2493_v29, %v2494_v33  ;;  %v936_v36 = vpop.f32.mrf.mxu0  ;;  %v977_v37 = vpop.f32.mrf.mxu1 }
 0x127   :  { %v323_v36 = vld [vmem:[#allocation5 + $0x10] sm:$0xf] }
 0x128   :  { %v2576_v39 = vrot.slane %v2568_v34, %v3574_v38  ;;  %v2583_v40 = vrot.slane %v2569_v35, %v3574_v38  ;;  %v402_v37 = vrot.slane %v323_v36, %v3551_v1  ;;  %v414_v42 = vrot.slane %v323_v36, %v3563_v10 }
 0x12a   :  { %v2584_v41 = vcombine.low %v2576_v39, %v2583_v40  ;;  %v410_v39 = vrot.slane %v323_v36, %v3554_v2  ;;  %v2469_v40 = vpop.permute.xlu0 %2468 }
 0x12b   :  { %vm2483_vm12 = vcmp.eq.s32.totalorder %v2469_v40, 1 }
 0x12c   :  { %2696 = vst [vmem:[#allocation7 + $0x8] sm:$0xff] %v2584_v41  ;;  %v406_v41 = vrot.slane %v323_v36, %v3560_v9 }
 0x140   :  { %v1173_v48 = vpop.f32.mrf.mxu0  ;;  %v1214_v0 = vpop.f32.mrf.mxu1 }
 0x141   :  { %v1174_v49 = vadd.f32 %v1173_v48, %v370_v43  ;;  %v1215_v50 = vadd.f32 %v1214_v0, %v378_v44 }
 0x142   :  { %v1175_v51 = vpop.f32.mrf.mxu0  ;;  %v1216_v52 = vpop.f32.mrf.mxu1 }
 0x143   :  { %v1176_v53 = vadd.f32 %v1175_v51, %v374_v46  ;;  %v2495_v54 = vsel %vm2481_vm10, 15.0, %v1174_v49  ;;  %v1217_v55 = vadd.f32 %v1216_v52, %v382_v47  ;;  %v2497_v56 = vsel %vm2481_vm10, 15.0, %v1215_v50 }
 0x144   :  { %v1177_v57 = vpop.f32.mrf.mxu0  ;;  %v1218_v58 = vpop.f32.mrf.mxu1 }
 0x145   :  { %v2496_v59 = vsel %vm2481_vm10, 15.0, %v1176_v53  ;;  %v2498_v60 = vsel %vm2481_vm10, 15.0, %v1217_v55 }
 0x146   :  { %v2585_v61 = vcombine.low %v2495_v54, %v2496_v59  ;;  %v2586_v62 = vcombine.low %v2497_v56, %v2498_v60  ;;  %v1178_v63 = vpop.f32.mrf.mxu0  ;;  %v1219_v3 = vpop.f32.mrf.mxu1 }
 0x147   :  { %v324_v63 = vld [vmem:[#allocation5 + $0x14] sm:$0xf] }
 0x148   :  { %v2593_v4 = vrot.slane %v2585_v61, %v3574_v38  ;;  %v2600_v5 = vrot.slane %v2586_v62, %v3574_v38  ;;  %v418_v3 = vrot.slane %v324_v63, %v3551_v1  ;;  %v430_v7 = vrot.slane %v324_v63, %v3563_v10 }
 0x14a   :  { %v2601_v6 = vcombine.low %v2593_v4, %v2600_v5  ;;  %v426_v4 = vrot.slane %v324_v63, %v3554_v2  ;;  %v2472_v5 = vpop.permute.xlu1 %2471 }
 0x14b   :  { %vm2484_vm13 = vcmp.eq.s32.totalorder %v2472_v5, 1 }
 0x14c   :  { %2697 = vst [vmem:[#allocation7 + $0x10] sm:$0xff] %v2601_v6  ;;  %v422_v6 = vrot.slane %v324_v63, %v3560_v9 }
 0x160   :  { %v1415_v15 = vpop.f32.mrf.mxu0  ;;  %v1456_v16 = vpop.f32.mrf.mxu1 }
 0x161   :  { %v1416_v17 = vadd.f32 %v1415_v15, %v386_v8  ;;  %v1457_v18 = vadd.f32 %v1456_v16, %v394_v11 }
 0x162   :  { %v1417_v19 = vpop.f32.mrf.mxu0  ;;  %v1458_v20 = vpop.f32.mrf.mxu1 }
 0x163   :  { %v1418_v21 = vadd.f32 %v1417_v19, %v390_v13  ;;  %v2499_v22 = vsel %vm2482_vm11, 15.0, %v1416_v17  ;;  %v1459_v23 = vadd.f32 %v1458_v20, %v398_v14  ;;  %v2501_v24 = vsel %vm2482_vm11, 15.0, %v1457_v18 }
 0x164   :  { %v1419_v25 = vpop.f32.mrf.mxu0  ;;  %v1460_v26 = vpop.f32.mrf.mxu1 }
 0x165   :  { %v2500_v27 = vsel %vm2482_vm11, 15.0, %v1418_v21  ;;  %v2502_v28 = vsel %vm2482_vm11, 15.0, %v1459_v23 }
 0x166   :  { %v2602_v29 = vcombine.low %v2499_v22, %v2500_v27  ;;  %v2603_v30 = vcombine.low %v2501_v24, %v2502_v28  ;;  %v1420_v31 = vpop.f32.mrf.mxu0  ;;  %v1461_v32 = vpop.f32.mrf.mxu1 }
 0x167   :  { %v325_v31 = vld [vmem:[#allocation5 + $0x18] sm:$0xf] }
 0x168   :  { %v2610_v33 = vrot.slane %v2602_v29, %v3574_v38  ;;  %v2617_v34 = vrot.slane %v2603_v30, %v3574_v38  ;;  %v434_v32 = vrot.slane %v325_v31, %v3551_v1  ;;  %v446_v36 = vrot.slane %v325_v31, %v3563_v10 }
 0x16a   :  { %v2618_v35 = vcombine.low %v2610_v33, %v2617_v34  ;;  %v442_v33 = vrot.slane %v325_v31, %v3554_v2  ;;  %v2475_v34 = vpop.permute.xlu0 %2474 }
 0x16b   :  { %vm2485_vm14 = vcmp.eq.s32.totalorder %v2475_v34, 1 }
 0x16c   :  { %2698 = vst [vmem:[#allocation7 + $0x18] sm:$0xff] %v2618_v35  ;;  %v438_v35 = vrot.slane %v325_v31, %v3560_v9 }
 0x180   :  { %v1657_v43 = vpop.f32.mrf.mxu0  ;;  %v1698_v44 = vpop.f32.mrf.mxu1 }
 0x181   :  { %v1658_v45 = vadd.f32 %v1657_v43, %v402_v37  ;;  %v1699_v46 = vadd.f32 %v1698_v44, %v410_v39 }
 0x182   :  { %v1659_v47 = vpop.f32.mrf.mxu0  ;;  %v1700_v48 = vpop.f32.mrf.mxu1 }
 0x183   :  { %v1660_v0 = vadd.f32 %v1659_v47, %v406_v41  ;;  %v2503_v49 = vsel %vm2483_vm12, 15.0, %v1658_v45  ;;  %v1701_v50 = vadd.f32 %v1700_v48, %v414_v42  ;;  %v2505_v51 = vsel %vm2483_vm12, 15.0, %v1699_v46 }
 0x184   :  { %v1661_v52 = vpop.f32.mrf.mxu0  ;;  %v1702_v53 = vpop.f32.mrf.mxu1 }
 0x185   :  { %v2504_v54 = vsel %vm2483_vm12, 15.0, %v1660_v0  ;;  %v2506_v55 = vsel %vm2483_vm12, 15.0, %v1701_v50 }
 0x186   :  { %v2619_v56 = vcombine.low %v2503_v49, %v2504_v54  ;;  %v2620_v57 = vcombine.low %v2505_v51, %v2506_v55  ;;  %v1662_v58 = vpop.f32.mrf.mxu0  ;;  %v1703_v59 = vpop.f32.mrf.mxu1 }
 0x187   :  { %v326_v58 = vld [vmem:[#allocation5 + $0x1c] sm:$0xf] }
 0x188   :  { %v2627_v60 = vrot.slane %v2619_v56, %v3574_v38  ;;  %v2634_v61 = vrot.slane %v2620_v57, %v3574_v38  ;;  %v450_v59 = vrot.slane %v326_v58, %v3551_v1 }
 0x18a   :  { %v2635_v62 = vcombine.low %v2627_v60, %v2634_v61  ;;  %v458_v60 = vrot.slane %v326_v58, %v3554_v2  ;;  %v454_v61 = vrot.slane %v326_v58, %v3560_v9 }
 0x18c   :  { %2699 = vst [vmem:[#allocation7 + $0x20] sm:$0xff] %v2635_v62  ;;  %v462_v62 = vrot.slane %v326_v58, %v3563_v10 }
 0x1a0   :  { %v1899_v8 = vpop.f32.mrf.mxu0  ;;  %v1940_v11 = vpop.f32.mrf.mxu1 }
 0x1a1   :  { %v1900_v12 = vadd.f32 %v1899_v8, %v418_v3  ;;  %v1941_v13 = vadd.f32 %v1940_v11, %v426_v4  ;;  %v2478_v4 = vpop.permute.xlu1 %2477 }
 0x1a2   :  { %v1901_v14 = vpop.f32.mrf.mxu0  ;;  %v1942_v15 = vpop.f32.mrf.mxu1  ;;  %vm2486_vm15 = vcmp.eq.s32.totalorder %v2478_v4, 1 }
 0x1a3   :  { %v1902_v16 = vadd.f32 %v1901_v14, %v422_v6  ;;  %v2507_v17 = vsel %vm2484_vm13, 15.0, %v1900_v12  ;;  %v1943_v18 = vadd.f32 %v1942_v15, %v430_v7  ;;  %v2509_v19 = vsel %vm2484_vm13, 15.0, %v1941_v13 }
 0x1a4   :  { %v1903_v20 = vpop.f32.mrf.mxu0  ;;  %v1944_v21 = vpop.f32.mrf.mxu1 }
 0x1a5   :  { %v2508_v22 = vsel %vm2484_vm13, 15.0, %v1902_v16  ;;  %v2510_v23 = vsel %vm2484_vm13, 15.0, %v1943_v18 }
 0x1a6   :  { %v2636_v24 = vcombine.low %v2507_v17, %v2508_v22  ;;  %v2637_v25 = vcombine.low %v2509_v19, %v2510_v23  ;;  %v1904_v26 = vpop.f32.mrf.mxu0  ;;  %v1945_v27 = vpop.f32.mrf.mxu1 }
 0x1a8   :  { %v2644_v28 = vrot.slane %v2636_v24, %v3574_v38  ;;  %v2651_v29 = vrot.slane %v2637_v25, %v3574_v38 }
 0x1aa   :  { %v2652_v30 = vcombine.low %v2644_v28, %v2651_v29 }
 0x1ac   :  { %2700 = vst [vmem:[#allocation7 + $0x28] sm:$0xff] %v2652_v30 }
 0x1c0   :  { %v2141_v37 = vpop.f32.mrf.mxu0  ;;  %v2182_v39 = vpop.f32.mrf.mxu1 }
 0x1c1   :  { %v2142_v40 = vadd.f32 %v2141_v37, %v434_v32  ;;  %v2183_v41 = vadd.f32 %v2182_v39, %v442_v33 }
 0x1c2   :  { %v2143_v42 = vpop.f32.mrf.mxu0  ;;  %v2184_v43 = vpop.f32.mrf.mxu1 }
 0x1c3   :  { %v2511_v44 = vsel %vm2485_vm14, 15.0, %v2142_v40  ;;  %v2513_v45 = vsel %vm2485_vm14, 15.0, %v2183_v41  ;;  %v2144_v46 = vadd.f32 %v2143_v42, %v438_v35  ;;  %v2185_v47 = vadd.f32 %v2184_v43, %v446_v36 }
 0x1c4   :  { %v2145_v48 = vpop.f32.mrf.mxu0  ;;  %v2186_v0 = vpop.f32.mrf.mxu1 }
 0x1c5   :  { %v2512_v49 = vsel %vm2485_vm14, 15.0, %v2144_v46  ;;  %v2514_v50 = vsel %vm2485_vm14, 15.0, %v2185_v47 }
 0x1c6   :  { %v2653_v51 = vcombine.low %v2511_v44, %v2512_v49  ;;  %v2654_v52 = vcombine.low %v2513_v45, %v2514_v50  ;;  %v2146_v53 = vpop.f32.mrf.mxu0  ;;  %v2187_v54 = vpop.f32.mrf.mxu1 }
 0x1c8   :  { %v2661_v55 = vrot.slane %v2653_v51, %v3574_v38  ;;  %v2668_v56 = vrot.slane %v2654_v52, %v3574_v38 }
 0x1ca   :  { %v2669_v57 = vcombine.low %v2661_v55, %v2668_v56 }
 0x1cc   :  { %2701 = vst [vmem:[#allocation7 + $0x30] sm:$0xff] %v2669_v57 }
 0x1e0   :  { %v2383_v63 = vpop.f32.mrf.mxu0  ;;  %v2424_v3 = vpop.f32.mrf.mxu1 }
 0x1e1   :  { %v2384_v5 = vadd.f32 %v2383_v63, %v450_v59  ;;  %v2425_v6 = vadd.f32 %v2424_v3, %v458_v60 }
 0x1e2   :  { %v2385_v7 = vpop.f32.mrf.mxu0  ;;  %v2426_v8 = vpop.f32.mrf.mxu1 }
 0x1e3   :  { %v2386_v11 = vadd.f32 %v2385_v7, %v454_v61  ;;  %v2427_v12 = vadd.f32 %v2426_v8, %v462_v62  ;;  %v2515_v15 = vsel %vm2486_vm15, 15.0, %v2384_v5  ;;  %v2517_v1 = vsel %vm2486_vm15, 15.0, %v2425_v6 }
 0x1e4   :  { %v2387_v13 = vpop.f32.mrf.mxu0  ;;  %v2428_v14 = vpop.f32.mrf.mxu1 }
 0x1e5   :  { %v2516_v16 = vsel %vm2486_vm15, 15.0, %v2386_v11  ;;  %v2518_v2 = vsel %vm2486_vm15, 15.0, %v2427_v12 }
 0x1e6   :  { %v2670_v17 = vcombine.low %v2515_v15, %v2516_v16  ;;  %v2671_v9 = vcombine.low %v2517_v1, %v2518_v2  ;;  %v2388_v18 = vpop.f32.mrf.mxu0  ;;  %v2429_v10 = vpop.f32.mrf.mxu1 }
 0x1e8   :  { %v2678_v19 = vrot.slane %v2670_v17, %v3574_v38  ;;  %v2685_v20 = vrot.slane %v2671_v9, %v3574_v38 }
 0x1ea   :  { %v2686_v21 = vcombine.low %v2678_v19, %v2685_v20 }
 0x1ec   :  { %2702 = vst [vmem:[#allocation7 + $0x38] sm:$0xff] %v2686_v21 }
 0x1ed   :  { %3425 = shalt.err (!%p3422_p0)
}
 0x1ee   :  { %s3449_s6 = smov 128   ;;  %s3450_s7 = smov 8  }
 0x1ef   :  { %2714 = dma.vmem_to_hbm [thread:$0]  %s2709_s30, 1024, %s3632_s4, [#allocation4], %s3449_s6, %s3449_s6, %s3450_s7  }
 0x1f0   :  { %3438 = dma.done.wait [#allocation4], 1024  }
 0x1f1   :  { %3439 = vsyncadd [#allocation4], 4294966272 }
 0x1f2   :  { %2718 = vsyncpa [#allocation3], 1 }
 0x1f3   :  { %2719 = vsyncpa [#allocation6], 1 }
 0x1f4   :  { %2720 = vsyncpa [#allocation4], 1 }

</bundles_post_ra>
